<compile_context>
chip_gen: v5e
topology: v5e:2x2
jax: 0.10.0
libtpu: 0.0.40
codegen_flags: <defaults>
</compile_context>

<pallas_src>
import functools

import jax
import jax.numpy as jnp
from jax import lax
from jax.experimental import pallas as pl
from jax.experimental.pallas import tpu as pltpu

TILE_M = 128   # rows per grid step (batch*spatial tiling)
LANE = 128     # lane width: pad K and N to multiples of this


def _round_up(x, m):
    return (x + m - 1) // m * m


# --------------------------------------------------------------------------- #
# Pallas kernel: out = act((x @ w) * scale + shift), f32 accumulate
# --------------------------------------------------------------------------- #
def _fused_matmul_kernel(x_ref, w_ref, scale_ref, shift_ref, o_ref, *, act):
    acc = jnp.dot(x_ref[...], w_ref[...], preferred_element_type=jnp.float32)
    out = acc * scale_ref[...] + shift_ref[...]        # per-channel affine (bias/BN)
    if act == "relu":
        out = jnp.maximum(out, 0.0)
    elif act == "sigmoid":
        out = 1.0 / (1.0 + jnp.exp(-out))              # exact sigmoid (EUP exp + div)
    o_ref[...] = out.astype(o_ref.dtype)


def fused_linear(x, w, scale, shift, *, act, mxu_dtype=jnp.float32):
    """act((x @ w) * scale + shift) via a batch-tiled Pallas kernel.

    x: (M, K) f32, w: (K, N) f32, scale/shift: (N,) f32.  Returns (M, N) f32.
    """
    M, K = x.shape
    K2, N = w.shape
    assert K == K2
    Mp = _round_up(max(M, 1), TILE_M)
    Kp = _round_up(K, LANE)
    Np = _round_up(N, LANE)

    x_p = jnp.pad(x, ((0, Mp - M), (0, Kp - K))).astype(mxu_dtype)
    w_p = jnp.pad(w, ((0, Kp - K), (0, Np - N))).astype(mxu_dtype)
    scale_p = jnp.pad(scale, (0, Np - N)).reshape(1, Np).astype(jnp.float32)
    shift_p = jnp.pad(shift, (0, Np - N)).reshape(1, Np).astype(jnp.float32)

    itemsize = jnp.dtype(mxu_dtype).itemsize
    cost = pl.CostEstimate(
        flops=2 * Mp * Kp * Np,
        transcendentals=(Mp * Np if act == "sigmoid" else 0),
        bytes_accessed=itemsize * (Mp * Kp + Kp * Np) + 4 * (Mp * Np + 2 * Np),
    )

    out = pl.pallas_call(
        functools.partial(_fused_matmul_kernel, act=act),
        out_shape=jax.ShapeDtypeStruct((Mp, Np), jnp.float32),
        grid=(Mp // TILE_M,),
        in_specs=[
            pl.BlockSpec((TILE_M, Kp), lambda i: (i, 0)),   # row tile streams
            pl.BlockSpec((Kp, Np), lambda i: (0, 0)),       # weights VMEM-resident
            pl.BlockSpec((1, Np), lambda i: (0, 0)),        # scale resident
            pl.BlockSpec((1, Np), lambda i: (0, 0)),        # shift resident
        ],
        out_specs=pl.BlockSpec((TILE_M, Np), lambda i: (i, 0)),
        compiler_params=pltpu.CompilerParams(dimension_semantics=("parallel",)),
        cost_estimate=cost,
    )(x_p, w_p, scale_p, shift_p)
    return out[:M, :N]


# --------------------------------------------------------------------------- #
# ConvTranspose2d (padding=0) as a Pallas matmul
# --------------------------------------------------------------------------- #
def conv_transpose_layer(x_nhwc, w_t, scale, shift, *, stride, act,
                         mxu_dtype=jnp.float32):
    """ConvTranspose2d + per-channel affine (bias / folded BN) + activation.

    x_nhwc: (B, H, W, Cin) f32.  w_t: PyTorch layout (Cin, Cout, k, k).
    """
    B, H, W, Cin = x_nhwc.shape
    _, Cout, k, _ = w_t.shape
    Ho = (H - 1) * stride + k
    Wo = (W - 1) * stride + k

    # ConvTranspose == regular conv over the zero-dilated, (k-1)-padded input with
    # the spatially flipped kernel (wrapper-side layout plumbing only, no FLOPs).
    xp = lax.pad(x_nhwc, jnp.array(0.0, x_nhwc.dtype),
                 ((0, 0, 0),
                  (k - 1, k - 1, stride - 1),
                  (k - 1, k - 1, stride - 1),
                  (0, 0, 0)))
    patches = jnp.concatenate(
        [xp[:, kh:kh + Ho, kw:kw + Wo, :] for kh in range(k) for kw in range(k)],
        axis=-1)                                       # (B, Ho, Wo, k*k*Cin)
    x2d = patches.reshape(B * Ho * Wo, k * k * Cin)

    wf = jnp.transpose(jnp.flip(w_t, axis=(-2, -1)), (2, 3, 0, 1))  # (kh,kw,Cin,Cout)
    w2d = wf.reshape(k * k * Cin, Cout)

    y2d = fused_linear(x2d, w2d, scale, shift, act=act, mxu_dtype=mxu_dtype)
    return y2d.reshape(B, Ho, Wo, Cout)


def _fold_bn(conv_bias, gamma, beta, running_mean, running_var, eps=1e-5):
    """Fold conv bias + eval-mode BatchNorm into per-channel scale/shift."""
    inv = gamma / jnp.sqrt(running_var + eps)
    return inv, (conv_bias - running_mean) * inv + beta


# --------------------------------------------------------------------------- #
# Full CNNDecoder forward
# --------------------------------------------------------------------------- #
def cnn_decoder_forward(x, params, *, mxu_dtype=jnp.float32):
    """x: (B, dim_latent) f32  ->  (B, 1, 28, 28) f32 (matches CNNDecoder.forward)."""
    (w_fc, b_fc, w_c1, b_c1, bn1, w_c2, b_c2, bn2, w_c3, b_c3) = params
    B = x.shape[0]
    C8 = w_c1.shape[0]

    # Linear(dim_latent -> 8h*7*7) + ReLU  (w_fc stored (in, out): x @ w == x @ W_pt.T)
    h = fused_linear(x, w_fc, jnp.ones_like(b_fc), b_fc, act="relu",
                     mxu_dtype=mxu_dtype)
    # view(-1, 8h, 7, 7) then go channels-last for the conv path.
    h = h.reshape(B, C8, 7, 7).transpose(0, 2, 3, 1)

    s1, t1 = _fold_bn(b_c1, *bn1)
    h = conv_transpose_layer(h, w_c1, s1, t1, stride=1, act="relu",
                             mxu_dtype=mxu_dtype)                       # (B,10,10,4h)
    s2, t2 = _fold_bn(b_c2, *bn2)
    h = conv_transpose_layer(h, w_c2, s2, t2, stride=1, act="relu",
                             mxu_dtype=mxu_dtype)                       # (B,13,13,2h)
    y = conv_transpose_layer(h, w_c3, jnp.ones_like(b_c3), b_c3, stride=2,
                             act="sigmoid", mxu_dtype=mxu_dtype)        # (B,28,28,1)
    return y.transpose(0, 3, 1, 2)                                      # NCHW


# --------------------------------------------------------------------------- #
# Parameters + pure-JAX reference (literal PyTorch semantics, NCHW)
# --------------------------------------------------------------------------- #
def init_params(key, dim_latent, dim_h):
    C8, C4, C2 = dim_h * 8, dim_h * 4, dim_h * 2
    ks = jax.random.split(key, 16)

    def uni(k, shape, bound):
        return jax.random.uniform(k, shape, jnp.float32, -bound, bound)

    w_fc = uni(ks[0], (dim_latent, C8 * 7 * 7), dim_latent ** -0.5)
    b_fc = uni(ks[1], (C8 * 7 * 7,), dim_latent ** -0.5)

    def conv_t(kw, kb, cin, cout, k=4):
        bound = (cin * k * k) ** -0.5
        return uni(kw, (cin, cout, k, k), bound), uni(kb, (cout,), bound)

    w_c1, b_c1 = conv_t(ks[2], ks[3], C8, C4)
    w_c2, b_c2 = conv_t(ks[4], ks[5], C4, C2)
    w_c3, b_c3 = conv_t(ks[6], ks[7], C2, 1)

    def bn(kg, kb, km, kv, c):
        gamma = jax.random.uniform(kg, (c,), jnp.float32, 0.5, 1.5)
        beta = uni(kb, (c,), 0.5)
        mean = uni(km, (c,), 0.5)
        var = jax.random.uniform(kv, (c,), jnp.float32, 0.5, 1.5)
        return (gamma, beta, mean, var)

    bn1 = bn(ks[8], ks[9], ks[10], ks[11], C4)
    bn2 = bn(ks[12], ks[13], ks[14], ks[15], C2)
    return (w_fc, b_fc, w_c1, b_c1, bn1, w_c2, b_c2, bn2, w_c3, b_c3)


def _conv_transpose_ref(x_nchw, w_t, b, stride):
    """Literal ConvTranspose2d definition: out[:, :, ih*s+kh, iw*s+kw] += x*W."""
    B, Cin, H, W = x_nchw.shape
    _, Cout, k, _ = w_t.shape
    Ho, Wo = (H - 1) * stride + k, (W - 1) * stride + k
    y = jnp.zeros((B, Cout, Ho, Wo), jnp.float32)
    for ih in range(H):
        for iw in range(W):
            contrib = jnp.einsum("bi,iokl->bokl", x_nchw[:, :, ih, iw], w_t)
            y = y.at[:, :, ih * stride:ih * stride + k,
                     iw * stride:iw * stride + k].add(contrib)
    return y + b[None, :, None, None]


def _bn_ref(x, gamma, beta, mean, var, eps=1e-5):
    inv = gamma / jnp.sqrt(var + eps)
    return (x - mean[None, :, None, None]) * inv[None, :, None, None] \
        + beta[None, :, None, None]


def reference_forward(x, params):
    (w_fc, b_fc, w_c1, b_c1, bn1, w_c2, b_c2, bn2, w_c3, b_c3) = params
    B = x.shape[0]
    C8 = w_c1.shape[0]
    h = jnp.maximum(x @ w_fc + b_fc, 0.0)
    h = h.reshape(B, C8, 7, 7)
    h = jnp.maximum(_bn_ref(_conv_transpose_ref(h, w_c1, b_c1, 1), *bn1), 0.0)
    h = jnp.maximum(_bn_ref(_conv_transpose_ref(h, w_c2, b_c2, 1), *bn2), 0.0)
    y = _conv_transpose_ref(h, w_c3, b_c3, 2)
    return 1.0 / (1.0 + jnp.exp(-y))


if __name__ == "__main__":
    key = jax.random.PRNGKey(0)
    k_x, k_p = jax.random.split(key)

    batch = 2
    dim_latent = 32
    dim_h = 4   # out_channels_convolution (small test size; PyTorch default is 32)

    x = jax.random.normal(k_x, (batch, dim_latent), dtype=jnp.float32)
    params = init_params(k_p, dim_latent, dim_h)

    # f32 path (exact semantics).
    out = jax.block_until_ready(cnn_decoder_forward(x, params))
    ref = reference_forward(x, params)
    assert out.shape == (batch, 1, 28, 28), out.shape
    assert jnp.allclose(out, ref, atol=1e-4, rtol=1e-4), \
        f"f32 mismatch, max abs err {float(jnp.max(jnp.abs(out - ref)))}"

    # bf16-MXU path (v6e/v7x perf mode): bf16 operands, f32 accumulation.
    out_bf16 = jax.block_until_ready(
        cnn_decoder_forward(x, params, mxu_dtype=jnp.bfloat16))
    assert jnp.allclose(out_bf16, ref, atol=5e-2, rtol=5e-2), \
        f"bf16 mismatch, max abs err {float(jnp.max(jnp.abs(out_bf16 - ref)))}"

    print("KERNEL_OK")
</pallas_src>

<mosaic_0001>
module attributes {stable_mosaic.version = 11 : i64} {
  func.func @_fused_matmul_kernel(%arg0: i32, %arg1: memref<128x128xf32, #tpu.memory_space<vmem>>, %arg2: memref<128x1664xf32, #tpu.memory_space<vmem>>, %arg3: memref<1x1664xf32, #tpu.memory_space<vmem>>, %arg4: memref<1x1664xf32, #tpu.memory_space<vmem>>, %arg5: memref<128x1664xf32, #tpu.memory_space<vmem>>) attributes {dimension_semantics = [#tpu.dimension_semantics<parallel>], iteration_bounds = array<i64: 1>, scalar_prefetch = 0 : i64, scratch_operands = 0 : i64, tpu.core_type = #tpu.core_type<tc>, window_params = [{transform_indices = @transform_0, window_bounds = array<i64: 128, 128>}, {pipeline_mode = #tpu.pipeline_mode<synchronous>, transform_indices = @transform_1, window_bounds = array<i64: 128, 1664>}, {pipeline_mode = #tpu.pipeline_mode<synchronous>, transform_indices = @transform_2, window_bounds = array<i64: 1, 1664>}, {pipeline_mode = #tpu.pipeline_mode<synchronous>, transform_indices = @transform_3, window_bounds = array<i64: 1, 1664>}, {transform_indices = @transform_4, window_bounds = array<i64: 128, 1664>}]} {
    %c0 = arith.constant 0 : index
    %c0_0 = arith.constant 0 : index
    %0 = vector.load %arg1[%c0, %c0_0] : memref<128x128xf32, #tpu.memory_space<vmem>>, vector<128x128xf32>
    %c0_1 = arith.constant 0 : index
    %c0_2 = arith.constant 0 : index
    %1 = vector.load %arg2[%c0_1, %c0_2] : memref<128x1664xf32, #tpu.memory_space<vmem>>, vector<128x1664xf32>
    %cst = arith.constant dense<0.000000e+00> : vector<128x1664xf32>
    %2 = tpu.matmul %0, %1, %cst {dimension_numbers = #tpu.dot_dimension_numbers<[1], [0], [0], [1], [0, 0, 1, 1], [], []>} : vector<128x128xf32>, vector<128x1664xf32>, vector<128x1664xf32> -> vector<128x1664xf32>
    %c0_3 = arith.constant 0 : index
    %c0_4 = arith.constant 0 : index
    %3 = vector.load %arg3[%c0_3, %c0_4] : memref<1x1664xf32, #tpu.memory_space<vmem>>, vector<1x1664xf32>
    %4 = vector.broadcast %3 : vector<1x1664xf32> to vector<128x1664xf32>
    %5 = arith.mulf %2, %4 : vector<128x1664xf32>
    %c0_5 = arith.constant 0 : index
    %c0_6 = arith.constant 0 : index
    %6 = vector.load %arg4[%c0_5, %c0_6] : memref<1x1664xf32, #tpu.memory_space<vmem>>, vector<1x1664xf32>
    %7 = vector.broadcast %6 : vector<1x1664xf32> to vector<128x1664xf32>
    %8 = arith.addf %5, %7 : vector<128x1664xf32>
    %cst_7 = arith.constant 0.000000e+00 : f32
    %9 = vector.broadcast %cst_7 : f32 to vector<128x1664xf32>
    %10 = arith.maximumf %8, %9 : vector<128x1664xf32>
    %c0_8 = arith.constant 0 : index
    %c0_9 = arith.constant 0 : index
    %11 = vector.load %arg5[%c0_8, %c0_9] : memref<128x1664xf32, #tpu.memory_space<vmem>>, vector<128x1664xf32>
    tpu.vector_store %arg5[%c0_8, %c0_9], %10 {strides = array<i32>} : memref<128x1664xf32, #tpu.memory_space<vmem>>, vector<128x1664xf32>,
    return
  }
  func.func @transform_0(%arg0: i32) -> (i32, i32) {
    %c0_i32 = arith.constant 0 : i32
    %c0_i32_0 = arith.constant 0 : i32
    return %arg0, %c0_i32 : i32, i32
  }
  func.func @transform_1(%arg0: i32) -> (i32, i32) {
    %c0_i32 = arith.constant 0 : i32
    %c0_i32_0 = arith.constant 0 : i32
    %c0_i32_1 = arith.constant 0 : i32
    return %c0_i32, %c0_i32_0 : i32, i32
  }
  func.func @transform_2(%arg0: i32) -> (i32, i32) {
    %c0_i32 = arith.constant 0 : i32
    %c0_i32_0 = arith.constant 0 : i32
    %c0_i32_1 = arith.constant 0 : i32
    return %c0_i32, %c0_i32_0 : i32, i32
  }
  func.func @transform_3(%arg0: i32) -> (i32, i32) {
    %c0_i32 = arith.constant 0 : i32
    %c0_i32_0 = arith.constant 0 : i32
    %c0_i32_1 = arith.constant 0 : i32
    return %c0_i32, %c0_i32_0 : i32, i32
  }
  func.func @transform_4(%arg0: i32) -> (i32, i32) {
    %c0_i32 = arith.constant 0 : i32
    %c0_i32_0 = arith.constant 0 : i32
    return %arg0, %c0_i32 : i32, i32
  }
}

</mosaic_0001>

<bundles_post_ra>
// kernel: tpu_custom_call.1
= control target key start
LH: loop header
LB: loop body
LE: loop exit
PB: predicated region body
PF: predicated region fallthrough
CT: control target
= control target key end

     0   :  { %9 = vsyncpa [#allocation3], 0  ;;  %s3061_s0 = inlined_call_operand.hbm [shape: f32[128,128], index: 0, kind: input, shape index: {}]   ;;  %s3062_s1 = inlined_call_operand.hbm [shape: f32[128,1664], index: 1, kind: input, shape index: {}]   ;;  %s3063_s2 = inlined_call_operand.hbm [shape: f32[1,1664], index: 2, kind: input, shape index: {}]   ;;  %s3064_s3 = inlined_call_operand.hbm [shape: f32[1,1664], index: 3, kind: input, shape index: {}]   ;;  %s3065_s4 = inlined_call_operand.hbm [shape: f32[128,1664], index: 4, kind: output, shape index: {}]  }
   0x1   :  { %10 = vsyncpa [#allocation6], 0 }
   0x2   :  { %11 = vsyncpa [#allocation9], 0  ;;  %s30_s17 = sshll.u32 %s3062_s1, 4  ;;  %s31_s17 = int_to_ptr.hbm [resolvable:$true] %s30_s17 }
   0x3   :  { %12 = vsyncpa [#allocation4], 0  ;;  %s2262_s18 = smov [#allocation5]   ;;  %s17_s22 = sshll.u32 %s3061_s0, 4  ;;  %s18_s22 = int_to_ptr.hbm [resolvable:$true] %s17_s22 }
   0x4   :  { %s32_s19 = sshll.u32 %s2262_s18, 4  ;;  %s2263_s23 = smov 1664   ;;  %s33_s19 = int_to_ptr.vmem [resolvable:$true] %s32_s19 }
   0x5   :  { %s2264_s24 = smov 104   ;;  %s2265_s25 = smov [#allocation2]  }
   0x6   :  { %38 = dma.hbm_to_vmem [thread:$0]  %s31_s17, 26624, %s33_s19, [#allocation6], %s2263_s23, %s2263_s23, %s2264_s24  }
   0x7   :  { %s19_s26 = sshll.u32 %s2265_s25, 4  ;;  %s2266_s1 = smov 128   ;;  %s20_s26 = int_to_ptr.vmem [resolvable:$true] %s19_s26 }
   0x8   :  { %s2267_s27 = smov 8   ;;  %s44_s30 = sshll.u32 %s3063_s2, 4  ;;  %s45_s30 = int_to_ptr.hbm [resolvable:$true] %s44_s30 }
   0x9   :  { %25 = dma.hbm_to_vmem [thread:$0]  %s18_s22, 2048, %s20_s26, [#allocation3], %s2266_s1, %s2266_s1, %s2267_s27  }
   0xa   :  { %s2268_s5 = smov [#allocation7]   ;;  %s55_s8 = sshll.u32 %s3064_s3, 4  ;;  %s56_s8 = int_to_ptr.hbm [resolvable:$true] %s55_s8 }
   0xb   :  { %s46_s0 = sshll.u32 %s2268_s5, 4  ;;  %s2269_s9 = smov [#allocation8]   ;;  %s47_s0 = int_to_ptr.vmem [resolvable:$true] %s46_s0 }
   0xc   :  { %49 = dma.hbm_to_vmem [thread:$0]  %s45_s30, 208, %s47_s0, [#allocation6]  }
   0xd   :  { %s57_s10 = sshll.u32 %s2269_s9, 4  ;;  %s58_s10 = int_to_ptr.vmem [resolvable:$true] %s57_s10 }
   0xe   :  { %60 = dma.hbm_to_vmem [thread:$0]  %s56_s8, 208, %s58_s10, [#allocation9]  }
   0xf   :  { %2254 = dma.done.wait [#allocation3], 2048  }
  0x10   :  { %2255 = vsyncadd [#allocation3], 4294965248 }
  0x11   :  { %2256 = dma.done.wait [#allocation6], 26832  }
  0x12   :  { %2257 = vsyncadd [#allocation6], 4294940464 }
  0x13   :  { %2258 = dma.done.wait [#allocation9], 208  }
  0x14   :  { %2259 = vsyncadd [#allocation9], 4294967088  ;;  %v288_v0 = vld [vmem:[#allocation5 + $0x618] sm:$0xff]  ;;  %v275_v1 = vld [vmem:[#allocation5 + $0x5b0] sm:$0xff]  ;;  %s2270_s2 = smov [#allocation10]   ;;  %s2044_s13 = sshll.u32 %s3065_s4, 4  ;;  %s2045_s13 = int_to_ptr.hbm [resolvable:$true] %s2044_s13 }
  0x15   :  { %2060 = vmatpush.msra.mxu2 %v288_v0  ;;  %2061 = vmatpush.msra.mxu3 %v288_v0  ;;  %v262_v2 = vld [vmem:[#allocation5 + $0x548] sm:$0xff]  ;;  %v249_v3 = vld [vmem:[#allocation5 + $0x4e0] sm:$0xff]  ;;  %v236_v4 = vld [vmem:[#allocation5 + $0x478] sm:$0xff]  ;;  %s2042_s3 = sshll.u32 %s2270_s2, 4  ;;  %s2043_s3 = int_to_ptr.vmem [resolvable:$true] %s2042_s3 }
  0x16   :  { %301 = vmatpush.msra.mxu0 %v288_v0  ;;  %2059 = vmatpush.msra.mxu1 %v288_v0  ;;  %v223_v5 = vld [vmem:[#allocation5 + $0x410] sm:$0xff]  ;;  %v210_v6 = vld [vmem:[#allocation5 + $0x3a8] sm:$0xff]  ;;  %v197_v7 = vld [vmem:[#allocation5 + $0x340] sm:$0xff] }
  0x17   :  { %2063 = vmatpush.msra.mxu2 %v275_v1  ;;  %2064 = vmatpush.msra.mxu3 %v275_v1  ;;  %v184_v8 = vld [vmem:[#allocation5 + $0x2d8] sm:$0xff]  ;;  %v171_v9 = vld [vmem:[#allocation5 + $0x270] sm:$0xff]  ;;  %v158_v10 = vld [vmem:[#allocation5 + $0x208] sm:$0xff] }
  0x18   :  { %302 = vmatpush.msra.mxu0 %v275_v1  ;;  %2062 = vmatpush.msra.mxu1 %v275_v1  ;;  %v145_v11 = vld [vmem:[#allocation5 + $0x1a0] sm:$0xff]  ;;  %v132_v12 = vld [vmem:[#allocation5 + $0x138] sm:$0xff]  ;;  %v119_v13 = vld [vmem:[#allocation5 + $0xd0] sm:$0xff] }
  0x19   :  { %2066 = vmatpush.msra.mxu2 %v262_v2  ;;  %2067 = vmatpush.msra.mxu3 %v262_v2  ;;  %v106_v14 = vld [vmem:[#allocation5 + $0x68] sm:$0xff]  ;;  %v93_v15 = vld [vmem:[#allocation5] sm:$0xff]  ;;  %v291_v19 = vld [vmem:[#allocation5 + $0x630] sm:$0xff] }
  0x1a   :  { %303 = vmatpush.msra.mxu0 %v262_v2  ;;  %2065 = vmatpush.msra.mxu1 %v262_v2  ;;  %v2311_v16 = vld [vmem:[#allocation2 + $0x40] sm:$0xff]  ;;  %v290_v18 = vld [vmem:[#allocation5 + $0x628] sm:$0xff]  ;;  %v264_v24 = vld [vmem:[#allocation5 + $0x558] sm:$0xff] }
  0x1b   :  { %2069 = vmatpush.msra.mxu2 %v249_v3  ;;  %2070 = vmatpush.msra.mxu3 %v249_v3  ;;  %v2313_v17 = vld [vmem:[#allocation2 + $0x60] sm:$0xff]  ;;  %v278_v21 = vld [vmem:[#allocation5 + $0x5c8] sm:$0xff]  ;;  %v292_v27 = vld [vmem:[#allocation5 + $0x638] sm:$0xff] }
  0x1c   :  { %304 = vmatpush.msra.mxu0 %v249_v3  ;;  %2068 = vmatpush.msra.mxu1 %v249_v3  ;;  %v277_v20 = vld [vmem:[#allocation5 + $0x5c0] sm:$0xff]  ;;  %v251_v28 = vld [vmem:[#allocation5 + $0x4f0] sm:$0xff]  ;;  %v252_v29 = vld [vmem:[#allocation5 + $0x4f8] sm:$0xff] }
  0x1d   :  { %2072 = vmatpush.msra.mxu2 %v236_v4  ;;  %2073 = vmatpush.msra.mxu3 %v236_v4  ;;  %v2317_v22 = vld [vmem:[#allocation2] sm:$0xff]  ;;  %v2323_v30 = vld [vmem:[#allocation2 + $0x48] sm:$0xff]  ;;  %v276_v32 = vld [vmem:[#allocation5 + $0x5b8] sm:$0xff] }
  0x1e   :  { %305 = vmatpush.msra.mxu0 %v236_v4  ;;  %2071 = vmatpush.msra.mxu1 %v236_v4  ;;  %v2319_v23 = vld [vmem:[#allocation2 + $0x20] sm:$0xff]  ;;  %v2325_v31 = vld [vmem:[#allocation2 + $0x68] sm:$0xff]  ;;  %v239_v34 = vld [vmem:[#allocation5 + $0x490] sm:$0xff] }
  0x1f   :  { %2075 = vmatpush.msra.mxu2 %v223_v5  ;;  %2076 = vmatpush.msra.mxu3 %v223_v5  ;;  %v265_v25 = vld [vmem:[#allocation5 + $0x560] sm:$0xff]  ;;  %v238_v33 = vld [vmem:[#allocation5 + $0x488] sm:$0xff]  ;;  %v279_v35 = vld [vmem:[#allocation5 + $0x5d0] sm:$0xff] }
  0x20   :  { %306 = vmatpush.msra.mxu0 %v223_v5  ;;  %2074 = vmatpush.msra.mxu1 %v223_v5  ;;  %v289_v26 = vld [vmem:[#allocation5 + $0x620] sm:$0xff]  ;;  %v263_v36 = vld [vmem:[#allocation5 + $0x550] sm:$0xff]  ;;  %v226_v38 = vld [vmem:[#allocation5 + $0x428] sm:$0xff] }
  0x21   :  { %2078 = vmatpush.msra.mxu2 %v210_v6  ;;  %2079 = vmatpush.msra.mxu3 %v210_v6  ;;  %v225_v37 = vld [vmem:[#allocation5 + $0x420] sm:$0xff]  ;;  %v266_v39 = vld [vmem:[#allocation5 + $0x568] sm:$0xff]  ;;  %v212_v41 = vld [vmem:[#allocation5 + $0x3b8] sm:$0xff] }
  0x22   :  { %307 = vmatpush.msra.mxu0 %v210_v6  ;;  %2077 = vmatpush.msra.mxu1 %v210_v6  ;;  %v250_v40 = vld [vmem:[#allocation5 + $0x4e8] sm:$0xff]  ;;  %v213_v42 = vld [vmem:[#allocation5 + $0x3c0] sm:$0xff]  ;;  %v199_v47 = vld [vmem:[#allocation5 + $0x350] sm:$0xff] }
  0x23   :  { %2081 = vmatpush.msra.mxu2 %v197_v7  ;;  %2082 = vmatpush.msra.mxu3 %v197_v7  ;;  %v253_v43 = vld [vmem:[#allocation5 + $0x500] sm:$0xff]  ;;  %v2329_v44 = vld [vmem:[#allocation2 + $0x8] sm:$0xff]  ;;  %v200_v48 = vld [vmem:[#allocation5 + $0x358] sm:$0xff] }
  0x24   :  { %308 = vmatpush.msra.mxu0 %v197_v7  ;;  %2080 = vmatpush.msra.mxu1 %v197_v7  ;;  %v2331_v45 = vld [vmem:[#allocation2 + $0x28] sm:$0xff]  ;;  %v237_v46 = vld [vmem:[#allocation5 + $0x480] sm:$0xff]  ;;  %v240_v49 = vld [vmem:[#allocation5 + $0x498] sm:$0xff] }
  0x25   :  { %2084 = vmatpush.msra.mxu2 %v184_v8  ;;  %2085 = vmatpush.msra.mxu3 %v184_v8  ;;  %v2335_v50 = vld [vmem:[#allocation2 + $0x50] sm:$0xff]  ;;  %v224_v52 = vld [vmem:[#allocation5 + $0x418] sm:$0xff]  ;;  %v186_v53 = vld [vmem:[#allocation5 + $0x2e8] sm:$0xff] }
  0x26   :  { %309 = vmatpush.msra.mxu0 %v184_v8  ;;  %2083 = vmatpush.msra.mxu1 %v184_v8  ;;  %v2337_v51 = vld [vmem:[#allocation2 + $0x70] sm:$0xff]  ;;  %v173_v57 = vld [vmem:[#allocation5 + $0x280] sm:$0xff]  ;;  %v174_v58 = vld [vmem:[#allocation5 + $0x288] sm:$0xff] }
  0x27   :  { %2087 = vmatpush.msra.mxu2 %v171_v9  ;;  %2088 = vmatpush.msra.mxu3 %v171_v9  ;;  %v187_v54 = vld [vmem:[#allocation5 + $0x2f0] sm:$0xff]  ;;  %v214_v59 = vld [vmem:[#allocation5 + $0x3c8] sm:$0xff]  ;;  %v160_v61 = vld [vmem:[#allocation5 + $0x218] sm:$0xff] }
  0x28   :  { %310 = vmatpush.msra.mxu0 %v171_v9  ;;  %2086 = vmatpush.msra.mxu1 %v171_v9  ;;  %v227_v55 = vld [vmem:[#allocation5 + $0x430] sm:$0xff]  ;;  %v198_v60 = vld [vmem:[#allocation5 + $0x348] sm:$0xff]  ;;  %v161_v62 = vld [vmem:[#allocation5 + $0x220] sm:$0xff] }
  0x29   :  { %2090 = vmatpush.msra.mxu2 %v158_v10  ;;  %2091 = vmatpush.msra.mxu3 %v158_v10  ;;  %v211_v56 = vld [vmem:[#allocation5 + $0x3b0] sm:$0xff]  ;;  %v201_v63 = vld [vmem:[#allocation5 + $0x360] sm:$0xff]  ;;  %v148_v4 = vld [vmem:[#allocation5 + $0x1b8] sm:$0xff] }
  0x2a   :  { %311 = vmatpush.msra.mxu0 %v158_v10  ;;  %2089 = vmatpush.msra.mxu1 %v158_v10  ;;  %v2341_v0 = vld [vmem:[#allocation2 + $0x10] sm:$0xff]  ;;  %v185_v2 = vld [vmem:[#allocation5 + $0x2e0] sm:$0xff]  ;;  %v188_v5 = vld [vmem:[#allocation5 + $0x2f8] sm:$0xff] }
  0x2b   :  { %2093 = vmatpush.msra.mxu2 %v145_v11  ;;  %2094 = vmatpush.msra.mxu3 %v145_v11  ;;  %v2343_v1 = vld [vmem:[#allocation2 + $0x30] sm:$0xff]  ;;  %v2347_v6 = vld [vmem:[#allocation2 + $0x58] sm:$0xff]  ;;  %v134_v9 = vld [vmem:[#allocation5 + $0x148] sm:$0xff] }
  0x2c   :  { %312 = vmatpush.msra.mxu0 %v145_v11  ;;  %2092 = vmatpush.msra.mxu1 %v145_v11  ;;  %v147_v3 = vld [vmem:[#allocation5 + $0x1b0] sm:$0xff]  ;;  %v2349_v7 = vld [vmem:[#allocation2 + $0x78] sm:$0xff] }
  0x2d   :  { %2096 = vmatpush.msra.mxu2 %v132_v12  ;;  %2097 = vmatpush.msra.mxu3 %v132_v12  ;;  %v172_v8 = vld [vmem:[#allocation5 + $0x278] sm:$0xff]  ;;  %v135_v10 = vld [vmem:[#allocation5 + $0x150] sm:$0xff] }
  0x2e   :  { %313 = vmatpush.msra.mxu0 %v132_v12  ;;  %2095 = vmatpush.msra.mxu1 %v132_v12  ;;  %v175_v11 = vld [vmem:[#allocation5 + $0x290] sm:$0xff] }
  0x2f   :  { %2099 = vmatpush.msra.mxu2 %v119_v13  ;;  %2100 = vmatpush.msra.mxu3 %v119_v13  ;;  %v159_v12 = vld [vmem:[#allocation5 + $0x210] sm:$0xff] }
  0x30   :  { %314 = vmatpush.msra.mxu0 %v119_v13  ;;  %2098 = vmatpush.msra.mxu1 %v119_v13  ;;  %v121_v13 = vld [vmem:[#allocation5 + $0xe0] sm:$0xff] }
  0x31   :  { %2102 = vmatpush.msra.mxu2 %v106_v14  ;;  %2103 = vmatpush.msra.mxu3 %v106_v14 }
  0x32   :  { %315 = vmatpush.msra.mxu0 %v106_v14  ;;  %2101 = vmatpush.msra.mxu1 %v106_v14  ;;  %v122_v14 = vld [vmem:[#allocation5 + $0xe8] sm:$0xff] }
  0x33   :  { %2105 = vmatpush.msra.mxu2 %v93_v15  ;;  %2106 = vmatpush.msra.mxu3 %v93_v15 }
  0x34   :  { %341 = vmatmul.f32.vlgmr.msra.gmra.mxu2 %v2311_v16  ;;  %353 = vmatmul.f32.vlgmr.msra.gmra.mxu3 %v2313_v17 }
  0x35   :  { %431 = vmatpush.msrb.mxu2 %v290_v18  ;;  %496 = vmatpush.msrb.mxu3 %v291_v19  ;;  %v146_v18 = vld [vmem:[#allocation5 + $0x1a8] sm:$0xff]  ;;  %v108_v19 = vld [vmem:[#allocation5 + $0x78] sm:$0xff] }
  0x36   :  { %316 = vmatpush.msra.mxu0 %v93_v15  ;;  %2104 = vmatpush.msra.mxu1 %v93_v15  ;;  %v162_v15 = vld [vmem:[#allocation5 + $0x228] sm:$0xff] }
  0x37   :  { %432 = vmatpush.msrb.mxu2 %v277_v20  ;;  %497 = vmatpush.msrb.mxu3 %v278_v21  ;;  %v109_v20 = vld [vmem:[#allocation5 + $0x80] sm:$0xff] }
  0x38   :  { %317 = vmatmul.f32.vlgmr.msra.gmra.mxu0 %v2317_v22  ;;  %329 = vmatmul.f32.vlgmr.msra.gmra.mxu1 %v2319_v23  ;;  %v149_v21 = vld [vmem:[#allocation5 + $0x1c0] sm:$0xff] }
  0x39   :  { %433 = vmatpush.msrb.mxu2 %v264_v24  ;;  %498 = vmatpush.msrb.mxu3 %v265_v25  ;;  %v2353_v24 = vld [vmem:[#allocation2 + $0x18] sm:$0xff] }
  0x3a   :  { %366 = vmatpush.msrb.mxu1 %v289_v26  ;;  %561 = vmatpush.msrb.mxu0 %v292_v27  ;;  %v2355_v25 = vld [vmem:[#allocation2 + $0x38] sm:$0xff]  ;;  %v133_v26 = vld [vmem:[#allocation5 + $0x140] sm:$0xff]  ;;  %v95_v27 = vld [vmem:[#allocation5 + $0x10] sm:$0xff] }
  0x3b   :  { %434 = vmatpush.msrb.mxu2 %v251_v28  ;;  %499 = vmatpush.msrb.mxu3 %v252_v29  ;;  %v96_v28 = vld [vmem:[#allocation5 + $0x18] sm:$0xff] }
  0x3c   :  { %344 = vmatmul.f32.gmra.mxu2 %v2323_v30  ;;  %356 = vmatmul.f32.gmra.mxu3 %v2325_v31  ;;  %v136_v29 = vld [vmem:[#allocation5 + $0x158] sm:$0xff] }
  0x3d   :  { %367 = vmatpush.msrb.mxu1 %v276_v32  ;;  %435 = vmatpush.msrb.mxu2 %v238_v33  ;;  %v120_v32 = vld [vmem:[#allocation5 + $0xd8] sm:$0xff]  ;;  %v123_v33 = vld [vmem:[#allocation5 + $0xf0] sm:$0xff] }
  0x3e   :  { %500 = vmatpush.msrb.mxu3 %v239_v34  ;;  %562 = vmatpush.msrb.mxu0 %v279_v35  ;;  %v294_v34 = vld [vmem:[#allocation5 + $0x648] sm:$0xff]  ;;  %v295_v35 = vld [vmem:[#allocation5 + $0x650] sm:$0xff] }
  0x3f   :  { %368 = vmatpush.msrb.mxu1 %v263_v36  ;;  %436 = vmatpush.msrb.mxu2 %v225_v37  ;;  %v107_v36 = vld [vmem:[#allocation5 + $0x70] sm:$0xff]  ;;  %v110_v37 = vld [vmem:[#allocation5 + $0x88] sm:$0xff] }
  0x40   :  { %501 = vmatpush.msrb.mxu3 %v226_v38  ;;  %563 = vmatpush.msrb.mxu0 %v266_v39  ;;  %v281_v38 = vld [vmem:[#allocation5 + $0x5e0] sm:$0xff]  ;;  %v282_v39 = vld [vmem:[#allocation5 + $0x5e8] sm:$0xff] }
  0x41   :  { %369 = vmatpush.msrb.mxu1 %v250_v40  ;;  %437 = vmatpush.msrb.mxu2 %v212_v41  ;;  %v94_v40 = vld [vmem:[#allocation5 + $0x8] sm:$0xff]  ;;  %v97_v41 = vld [vmem:[#allocation5 + $0x20] sm:$0xff] }
  0x42   :  { %502 = vmatpush.msrb.mxu3 %v213_v42  ;;  %564 = vmatpush.msrb.mxu0 %v253_v43  ;;  %v293_v42 = vld [vmem:[#allocation5 + $0x640] sm:$0xff]  ;;  %v296_v43 = vld [vmem:[#allocation5 + $0x658] sm:$0xff] }
  0x43   :  { %320 = vmatmul.f32.gmra.mxu0 %v2329_v44  ;;  %332 = vmatmul.f32.gmra.mxu1 %v2331_v45 }
  0x44   :  { %370 = vmatpush.msrb.mxu1 %v237_v46  ;;  %438 = vmatpush.msrb.mxu2 %v199_v47  ;;  %v269_v46 = vld [vmem:[#allocation5 + $0x580] sm:$0xff]  ;;  %v280_v47 = vld [vmem:[#allocation5 + $0x5d8] sm:$0xff] }
  0x45   :  { %503 = vmatpush.msrb.mxu3 %v200_v48  ;;  %565 = vmatpush.msrb.mxu0 %v240_v49  ;;  %v283_v48 = vld [vmem:[#allocation5 + $0x5f0] sm:$0xff]  ;;  %v268_v49 = vld [vmem:[#allocation5 + $0x578] sm:$0xff] }
  0x46   :  { %347 = vmatmul.f32.gmra.mxu2 %v2335_v50  ;;  %359 = vmatmul.f32.gmra.mxu3 %v2337_v51 }
  0x47   :  { %371 = vmatpush.msrb.mxu1 %v224_v52  ;;  %439 = vmatpush.msrb.mxu2 %v186_v53  ;;  %v267_v52 = vld [vmem:[#allocation5 + $0x570] sm:$0xff]  ;;  %v256_v53 = vld [vmem:[#allocation5 + $0x518] sm:$0xff] }
  0x48   :  { %504 = vmatpush.msrb.mxu3 %v187_v54  ;;  %566 = vmatpush.msrb.mxu0 %v227_v55  ;;  %v270_v54 = vld [vmem:[#allocation5 + $0x588] sm:$0xff]  ;;  %v255_v55 = vld [vmem:[#allocation5 + $0x510] sm:$0xff] }
  0x49   :  { %372 = vmatpush.msrb.mxu1 %v211_v56  ;;  %440 = vmatpush.msrb.mxu2 %v173_v57  ;;  %v254_v56 = vld [vmem:[#allocation5 + $0x508] sm:$0xff]  ;;  %v243_v57 = vld [vmem:[#allocation5 + $0x4b0] sm:$0xff] }
  0x4a   :  { %505 = vmatpush.msrb.mxu3 %v174_v58  ;;  %567 = vmatpush.msrb.mxu0 %v214_v59  ;;  %v257_v58 = vld [vmem:[#allocation5 + $0x520] sm:$0xff]  ;;  %v242_v59 = vld [vmem:[#allocation5 + $0x4a8] sm:$0xff] }
  0x4b   :  { %373 = vmatpush.msrb.mxu1 %v198_v60  ;;  %441 = vmatpush.msrb.mxu2 %v160_v61  ;;  %v241_v60 = vld [vmem:[#allocation5 + $0x4a0] sm:$0xff]  ;;  %v244_v61 = vld [vmem:[#allocation5 + $0x4b8] sm:$0xff] }
  0x4c   :  { %506 = vmatpush.msrb.mxu3 %v161_v62  ;;  %568 = vmatpush.msrb.mxu0 %v201_v63  ;;  %v229_v62 = vld [vmem:[#allocation5 + $0x440] sm:$0xff]  ;;  %v230_v63 = vld [vmem:[#allocation5 + $0x448] sm:$0xff] }
  0x4d   :  { %323 = vmatmul.f32.gmra.mxu0 %v2341_v0  ;;  %335 = vmatmul.f32.gmra.mxu1 %v2343_v1 }
  0x4e   :  { %374 = vmatpush.msrb.mxu1 %v185_v2  ;;  %442 = vmatpush.msrb.mxu2 %v147_v3  ;;  %v228_v2 = vld [vmem:[#allocation5 + $0x438] sm:$0xff]  ;;  %v231_v3 = vld [vmem:[#allocation5 + $0x450] sm:$0xff] }
  0x4f   :  { %507 = vmatpush.msrb.mxu3 %v148_v4  ;;  %569 = vmatpush.msrb.mxu0 %v188_v5  ;;  %v216_v4 = vld [vmem:[#allocation5 + $0x3d8] sm:$0xff]  ;;  %v217_v5 = vld [vmem:[#allocation5 + $0x3e0] sm:$0xff] }
  0x50   :  { %350 = vmatmul.f32.gmra.mxu2 %v2347_v6  ;;  %362 = vmatmul.f32.gmra.mxu3 %v2349_v7 }
  0x51   :  { %375 = vmatpush.msrb.mxu1 %v172_v8  ;;  %443 = vmatpush.msrb.mxu2 %v134_v9  ;;  %v215_v8 = vld [vmem:[#allocation5 + $0x3d0] sm:$0xff]  ;;  %v218_v9 = vld [vmem:[#allocation5 + $0x3e8] sm:$0xff] }
  0x52   :  { %508 = vmatpush.msrb.mxu3 %v135_v10  ;;  %570 = vmatpush.msrb.mxu0 %v175_v11  ;;  %v203_v10 = vld [vmem:[#allocation5 + $0x370] sm:$0xff]  ;;  %v204_v11 = vld [vmem:[#allocation5 + $0x378] sm:$0xff] }
  0x53   :  { %376 = vmatpush.msrb.mxu1 %v159_v12  ;;  %444 = vmatpush.msrb.mxu2 %v121_v13  ;;  %v202_v12 = vld [vmem:[#allocation5 + $0x368] sm:$0xff]  ;;  %v205_v13 = vld [vmem:[#allocation5 + $0x380] sm:$0xff] }
  0x54   :  { %509 = vmatpush.msrb.mxu3 %v122_v14  ;;  %571 = vmatpush.msrb.mxu0 %v162_v15  ;;  %v190_v14 = vld [vmem:[#allocation5 + $0x308] sm:$0xff]  ;;  %v191_v15 = vld [vmem:[#allocation5 + $0x310] sm:$0xff] }
  0x55   :  { %377 = vmatpush.msrb.mxu1 %v146_v18  ;;  %445 = vmatpush.msrb.mxu2 %v108_v19  ;;  %v189_v18 = vld [vmem:[#allocation5 + $0x300] sm:$0xff]  ;;  %v192_v19 = vld [vmem:[#allocation5 + $0x318] sm:$0xff] }
  0x56   :  { %510 = vmatpush.msrb.mxu3 %v109_v20  ;;  %572 = vmatpush.msrb.mxu0 %v149_v21  ;;  %v177_v20 = vld [vmem:[#allocation5 + $0x2a0] sm:$0xff]  ;;  %v178_v21 = vld [vmem:[#allocation5 + $0x2a8] sm:$0xff] }
  0x57   :  { %326 = vmatmul.f32.gmra.mxu0 %v2353_v24  ;;  %338 = vmatmul.f32.gmra.mxu1 %v2355_v25 }
  0x58   :  { %378 = vmatpush.msrb.mxu1 %v133_v26  ;;  %446 = vmatpush.msrb.mxu2 %v95_v27  ;;  %v176_v26 = vld [vmem:[#allocation5 + $0x298] sm:$0xff]  ;;  %v179_v27 = vld [vmem:[#allocation5 + $0x2b0] sm:$0xff] }
  0x59   :  { %511 = vmatpush.msrb.mxu3 %v96_v28  ;;  %573 = vmatpush.msrb.mxu0 %v136_v29  ;;  %v165_v28 = vld [vmem:[#allocation5 + $0x240] sm:$0xff]  ;;  %v163_v29 = vld [vmem:[#allocation5 + $0x230] sm:$0xff] }
  0x5a   :  { %379 = vmatpush.msrb.mxu1 %v120_v32  ;;  %447 = vmatmul.f32.vlgmr.msrb.gmra.mxu2 %v2317_v22  ;;  %v166_v32 = vld [vmem:[#allocation5 + $0x248] sm:$0xff] }
  0x5b   :  { %512 = vmatmul.f32.vlgmr.msrb.gmra.mxu3 %v2317_v22  ;;  %574 = vmatpush.msrb.mxu0 %v123_v33  ;;  %v152_v33 = vld [vmem:[#allocation5 + $0x1d8] sm:$0xff] }
  0x5c   :  { %691 = vmatpush.msra.mxu2 %v294_v34  ;;  %756 = vmatpush.msra.mxu3 %v295_v35  ;;  %v150_v34 = vld [vmem:[#allocation5 + $0x1c8] sm:$0xff]  ;;  %v153_v35 = vld [vmem:[#allocation5 + $0x1e0] sm:$0xff] }
  0x5d   :  { %380 = vmatpush.msrb.mxu1 %v107_v36  ;;  %575 = vmatpush.msrb.mxu0 %v110_v37  ;;  %v139_v36 = vld [vmem:[#allocation5 + $0x170] sm:$0xff]  ;;  %v137_v37 = vld [vmem:[#allocation5 + $0x160] sm:$0xff] }
  0x5e   :  { %692 = vmatpush.msra.mxu2 %v281_v38  ;;  %757 = vmatpush.msra.mxu3 %v282_v39  ;;  %v140_v38 = vld [vmem:[#allocation5 + $0x178] sm:$0xff]  ;;  %v126_v39 = vld [vmem:[#allocation5 + $0x108] sm:$0xff] }
  0x5f   :  { %381 = vmatpush.msrb.mxu1 %v94_v40  ;;  %576 = vmatpush.msrb.mxu0 %v97_v41  ;;  %v124_v40 = vld [vmem:[#allocation5 + $0xf8] sm:$0xff]  ;;  %v127_v41 = vld [vmem:[#allocation5 + $0x110] sm:$0xff] }
  0x60   :  { %382 = vmatmul.f32.vlgmr.msrb.gmra.mxu1 %v2317_v22  ;;  %577 = vmatmul.f32.vlgmr.msrb.gmra.mxu0 %v2317_v22 }
  0x61   :  { %626 = vmatpush.msra.mxu1 %v293_v42  ;;  %821 = vmatpush.msra.mxu0 %v296_v43  ;;  %v113_v42 = vld [vmem:[#allocation5 + $0xa0] sm:$0xff] }
  0x62   :  { %450 = vmatmul.f32.gmra.mxu2 %v2329_v44  ;;  %758 = vmatpush.msra.mxu3 %v269_v46  ;;  %v2401_v43 = vld [vmem:[#allocation7] sm:$0xff]  ;;  %v2405_v46 = vld [vmem:[#allocation8] sm:$0xff] }
  0x63   :  { %515 = vmatmul.f32.gmra.mxu3 %v2329_v44  ;;  %627 = vmatpush.msra.mxu1 %v280_v47  ;;  %v111_v47 = vld [vmem:[#allocation5 + $0x90] sm:$0xff] }
  0x64   :  { %822 = vmatpush.msra.mxu0 %v283_v48  ;;  %693 = vmatpush.msra.mxu2 %v268_v49  ;;  %v114_v48 = vld [vmem:[#allocation5 + $0xa8] sm:$0xff]  ;;  %v99_v49 = vld [vmem:[#allocation5 + $0x30] sm:$0xff] }
  0x65   :  { %628 = vmatpush.msra.mxu1 %v267_v52  ;;  %759 = vmatpush.msra.mxu3 %v256_v53  ;;  %v2413_v52 = vperm.slane %v2405_v46, 0  ;;  %v100_v53 = vld [vmem:[#allocation5 + $0x38] sm:$0xff] }
  0x66   :  { %823 = vmatpush.msra.mxu0 %v270_v54  ;;  %694 = vmatpush.msra.mxu2 %v255_v55 }
  0x67   :  { %629 = vmatpush.msra.mxu1 %v254_v56  ;;  %760 = vmatpush.msra.mxu3 %v243_v57 }
  0x68   :  { %385 = vmatmul.f32.gmra.mxu1 %v2329_v44  ;;  %580 = vmatmul.f32.gmra.mxu0 %v2329_v44 }
  0x69   :  { %824 = vmatpush.msra.mxu0 %v257_v58  ;;  %695 = vmatpush.msra.mxu2 %v242_v59 }
  0x6a   :  { %453 = vmatmul.f32.gmra.mxu2 %v2341_v0  ;;  %630 = vmatpush.msra.mxu1 %v241_v60 }
  0x6b   :  { %518 = vmatmul.f32.gmra.mxu3 %v2341_v0  ;;  %825 = vmatpush.msra.mxu0 %v244_v61 }
  0x6c   :  { %696 = vmatpush.msra.mxu2 %v229_v62  ;;  %761 = vmatpush.msra.mxu3 %v230_v63 }
  0x6d   :  { %631 = vmatpush.msra.mxu1 %v228_v2  ;;  %826 = vmatpush.msra.mxu0 %v231_v3 }
  0x6e   :  { %697 = vmatpush.msra.mxu2 %v216_v4  ;;  %762 = vmatpush.msra.mxu3 %v217_v5 }
  0x6f   :  { %632 = vmatpush.msra.mxu1 %v215_v8  ;;  %827 = vmatpush.msra.mxu0 %v218_v9  ;;  %v98_v8 = vld [vmem:[#allocation5 + $0x28] sm:$0xff]  ;;  %v101_v9 = vld [vmem:[#allocation5 + $0x40] sm:$0xff] }
  0x70   :  { %388 = vmatmul.f32.gmra.mxu1 %v2341_v0  ;;  %583 = vmatmul.f32.gmra.mxu0 %v2341_v0 }
  0x71   :  { %698 = vmatpush.msra.mxu2 %v203_v10  ;;  %763 = vmatpush.msra.mxu3 %v204_v11  ;;  %v298_v10 = vld [vmem:[#allocation5 + $0x668] sm:$0xff]  ;;  %v299_v11 = vld [vmem:[#allocation5 + $0x670] sm:$0xff] }
  0x72   :  { %456 = vmatmul.f32.gmra.mxu2 %v2353_v24  ;;  %633 = vmatpush.msra.mxu1 %v202_v12 }
  0x73   :  { %521 = vmatmul.f32.gmra.mxu3 %v2353_v24  ;;  %828 = vmatpush.msra.mxu0 %v205_v13 }
  0x74   :  { %699 = vmatpush.msra.mxu2 %v190_v14  ;;  %764 = vmatpush.msra.mxu3 %v191_v15 }
  0x75   :  { %634 = vmatpush.msra.mxu1 %v189_v18  ;;  %829 = vmatpush.msra.mxu0 %v192_v19 }
  0x76   :  { %700 = vmatpush.msra.mxu2 %v177_v20  ;;  %765 = vmatpush.msra.mxu3 %v178_v21 }
  0x77   :  { %635 = vmatpush.msra.mxu1 %v176_v26  ;;  %830 = vmatpush.msra.mxu0 %v179_v27 }
  0x78   :  { %391 = vmatmul.f32.gmra.mxu1 %v2353_v24  ;;  %586 = vmatmul.f32.gmra.mxu0 %v2353_v24 }
  0x79   :  { %766 = vmatpush.msra.mxu3 %v165_v28  ;;  %636 = vmatpush.msra.mxu1 %v163_v29 }
  0x7a   :  { %459 = vmatmul.f32.gmra.mxu2 %v2319_v23  ;;  %831 = vmatpush.msra.mxu0 %v166_v32 }
  0x7b   :  { %524 = vmatmul.f32.gmra.mxu3 %v2319_v23  ;;  %637 = vmatpush.msra.mxu1 %v150_v34  ;;  %v300_v34 = vld [vmem:[#allocation5 + $0x678] sm:$0xff] }
  0x7c   :  { %767 = vmatpush.msra.mxu3 %v152_v33  ;;  %832 = vmatpush.msra.mxu0 %v153_v35  ;;  %v297_v33 = vld [vmem:[#allocation5 + $0x660] sm:$0xff] }
  0x7d   :  { %638 = vmatpush.msra.mxu1 %v137_v37  ;;  %v285_v35 = vld [vmem:[#allocation5 + $0x600] sm:$0xff] }
  0x7e   :  { %768 = vmatpush.msra.mxu3 %v139_v36  ;;  %833 = vmatpush.msra.mxu0 %v140_v38 }
  0x7f   :  { %639 = vmatpush.msra.mxu1 %v124_v40 }
  0x80   :  { %394 = vmatmul.f32.gmra.mxu1 %v2319_v23  ;;  %589 = vmatmul.f32.gmra.mxu0 %v2319_v23  ;;  %v164_v23 = vld [vmem:[#allocation5 + $0x238] sm:$0xff] }
  0x81   :  { %701 = vmatpush.msra.mxu2 %v164_v23  ;;  %769 = vmatpush.msra.mxu3 %v126_v39 }
  0x82   :  { %462 = vmatmul.f32.gmra.mxu2 %v2331_v45  ;;  %834 = vmatpush.msra.mxu0 %v127_v41 }
  0x83   :  { %527 = vmatmul.f32.gmra.mxu3 %v2331_v45  ;;  %640 = vmatpush.msra.mxu1 %v111_v47 }
  0x84   :  { %770 = vmatpush.msra.mxu3 %v113_v42  ;;  %835 = vmatpush.msra.mxu0 %v114_v48 }
  0x85   :  { %641 = vmatpush.msra.mxu1 %v98_v8 }
  0x86   :  { %771 = vmatpush.msra.mxu3 %v100_v53  ;;  %836 = vmatpush.msra.mxu0 %v101_v9  ;;  %v271_v9 = vld [vmem:[#allocation5 + $0x590] sm:$0xff] }
  0x87   :  { %886 = vmatpush.msrb.mxu1 %v297_v33 }
  0x88   :  { %397 = vmatmul.f32.gmra.mxu1 %v2331_v45  ;;  %592 = vmatmul.f32.gmra.mxu0 %v2331_v45  ;;  %v151_v45 = vld [vmem:[#allocation5 + $0x1d0] sm:$0xff] }
  0x89   :  { %702 = vmatpush.msra.mxu2 %v151_v45  ;;  %1016 = vmatpush.msrb.mxu3 %v299_v11 }
  0x8a   :  { %465 = vmatmul.f32.gmra.mxu2 %v2343_v1  ;;  %1081 = vmatpush.msrb.mxu0 %v300_v34  ;;  %v258_v34 = vld [vmem:[#allocation5 + $0x528] sm:$0xff] }
  0x8b   :  { %530 = vmatmul.f32.gmra.mxu3 %v2343_v1 }
  0x90   :  { %400 = vmatmul.f32.gmra.mxu1 %v2343_v1  ;;  %595 = vmatmul.f32.gmra.mxu0 %v2343_v1  ;;  %v138_v1 = vld [vmem:[#allocation5 + $0x168] sm:$0xff] }
  0x91   :  { %703 = vmatpush.msra.mxu2 %v138_v1  ;;  %v286_v1 = vld [vmem:[#allocation5 + $0x608] sm:$0xff] }
  0x92   :  { %468 = vmatmul.f32.gmra.mxu2 %v2355_v25  ;;  %1017 = vmatpush.msrb.mxu3 %v286_v1 }
  0x93   :  { %533 = vmatmul.f32.gmra.mxu3 %v2355_v25 }
  0x98   :  { %403 = vmatmul.f32.gmra.mxu1 %v2355_v25  ;;  %598 = vmatmul.f32.gmra.mxu0 %v2355_v25  ;;  %v125_v25 = vld [vmem:[#allocation5 + $0x100] sm:$0xff] }
  0x99   :  { %704 = vmatpush.msra.mxu2 %v125_v25 }
  0x9a   :  { %471 = vmatmul.f32.gmra.mxu2 %v2311_v16 }
  0x9b   :  { %536 = vmatmul.f32.gmra.mxu3 %v2311_v16 }
  0xa0   :  { %406 = vmatmul.f32.gmra.mxu1 %v2311_v16  ;;  %601 = vmatmul.f32.gmra.mxu0 %v2311_v16  ;;  %v112_v16 = vld [vmem:[#allocation5 + $0x98] sm:$0xff] }
  0xa1   :  { %705 = vmatpush.msra.mxu2 %v112_v16 }
  0xa2   :  { %474 = vmatmul.f32.gmra.mxu2 %v2323_v30 }
  0xa3   :  { %539 = vmatmul.f32.gmra.mxu3 %v2323_v30  ;;  %706 = vmatpush.msra.mxu2 %v99_v49 }
  0xa5   :  { %951 = vmatpush.msrb.mxu2 %v298_v10  ;;  %v274_v10 = vld [vmem:[#allocation5 + $0x5a8] sm:$0xff] }
  0xa7   :  { %952 = vmatpush.msrb.mxu2 %v285_v35  ;;  %v261_v35 = vld [vmem:[#allocation5 + $0x540] sm:$0xff] }
  0xa8   :  { %409 = vmatmul.f32.gmra.mxu1 %v2323_v30  ;;  %604 = vmatmul.f32.gmra.mxu0 %v2323_v30  ;;  %v2409_v30 = vperm.slane %v2401_v43, 0 }
  0xaa   :  { %477 = vmatmul.f32.gmra.mxu2 %v2335_v50 }
  0xab   :  { %542 = vmatmul.f32.gmra.mxu3 %v2335_v50 }
  0xb0   :  { %412 = vmatmul.f32.gmra.mxu1 %v2335_v50  ;;  %607 = vmatmul.f32.gmra.mxu0 %v2335_v50 }
  0xb2   :  { %480 = vmatmul.f32.gmra.mxu2 %v2347_v6 }
  0xb3   :  { %545 = vmatmul.f32.gmra.mxu3 %v2347_v6 }
  0xb5   :  { %v318_v54 = vpop.f32.mrf.mxu0  ;;  %v330_v50 = vpop.f32.mrf.mxu1 }
  0xb6   :  { %v1176_v55 = vmul.f32 %v2409_v30, %v318_v54  ;;  %v1228_v56 = vmul.f32 %v2409_v30, %v330_v50 }
  0xb7   :  { %v342_v57 = vpop.f32.mrf.mxu2  ;;  %v354_v58 = vpop.f32.mrf.mxu3 }
  0xb8   :  { %415 = vmatmul.f32.gmra.mxu1 %v2347_v6  ;;  %610 = vmatmul.f32.gmra.mxu0 %v2347_v6  ;;  %v1414_v59 = vadd.f32 %v2413_v52, %v1176_v55  ;;  %v1466_v60 = vadd.f32 %v2413_v52, %v1228_v56  ;;  %v1280_v61 = vmul.f32 %v2409_v30, %v342_v57  ;;  %v284_v55 = vld [vmem:[#allocation5 + $0x5f8] sm:$0xff]  ;;  %v287_v56 = vld [vmem:[#allocation5 + $0x610] sm:$0xff] }
  0xb9   :  { %v1332_v62 = vmul.f32 %v2409_v30, %v354_v58  ;;  %v272_v57 = vld [vmem:[#allocation5 + $0x598] sm:$0xff]  ;;  %v273_v58 = vld [vmem:[#allocation5 + $0x5a0] sm:$0xff]  ;;  %887 = vmatpush.msrb.mxu1 %v284_v55  ;;  %1082 = vmatpush.msrb.mxu0 %v287_v56 }
  0xba   :  { %483 = vmatmul.f32.gmra.mxu2 %v2313_v17  ;;  %v1622_v63 = vmax.f32 %v1414_v59, 0.0  ;;  %v1674_v2 = vmax.f32 %v1466_v60, 0.0  ;;  %v1518_v3 = vadd.f32 %v2413_v52, %v1280_v61  ;;  %1018 = vmatpush.msrb.mxu3 %v273_v58  ;;  %v248_v55 = vld [vmem:[#allocation5 + $0x4d8] sm:$0xff]  ;;  %v233_v58 = vld [vmem:[#allocation5 + $0x460] sm:$0xff] }
  0xbb   :  { %548 = vmatmul.f32.gmra.mxu3 %v2313_v17  ;;  %v1570_v4 = vadd.f32 %v2413_v52, %v1332_v62  ;;  %953 = vmatpush.msrb.mxu2 %v272_v57 }
  0xbc   :  { %1830 = vst [vmem:[#allocation10] sm:$0xff] %v1622_v63  ;;  %v1726_v6 = vmax.f32 %v1518_v3, 0.0  ;;  %888 = vmatpush.msrb.mxu1 %v271_v9  ;;  %1083 = vmatpush.msrb.mxu0 %v274_v10 }
  0xbd   :  { %1882 = vst [vmem:[#allocation10 + $0x1a0] sm:$0xff] %v1674_v2  ;;  %v1778_v5 = vmax.f32 %v1570_v4, 0.0 }
  0xbe   :  { %1934 = vst [vmem:[#allocation10 + $0x340] sm:$0xff] %v1726_v6  ;;  %889 = vmatpush.msrb.mxu1 %v258_v34  ;;  %1084 = vmatpush.msrb.mxu0 %v261_v35 }
  0xbf   :  { %1986 = vst [vmem:[#allocation10 + $0x4e0] sm:$0xff] %v1778_v5  ;;  %v345_v12 = vpop.f32.mrf.mxu2  ;;  %v357_v13 = vpop.f32.mrf.mxu3 }
  0xc0   :  { %418 = vmatmul.f32.gmra.mxu1 %v2313_v17  ;;  %613 = vmatmul.f32.gmra.mxu0 %v2313_v17  ;;  %v321_v14 = vpop.f32.mrf.mxu0  ;;  %v333_v15 = vpop.f32.mrf.mxu1  ;;  %v1293_v18 = vmul.f32 %v2409_v30, %v345_v12  ;;  %v1345_v19 = vmul.f32 %v2409_v30, %v357_v13  ;;  %v259_v12 = vld [vmem:[#allocation5 + $0x530] sm:$0xff]  ;;  %v260_v13 = vld [vmem:[#allocation5 + $0x538] sm:$0xff] }
  0xc1   :  { %v1189_v20 = vmul.f32 %v2409_v30, %v321_v14  ;;  %v1241_v21 = vmul.f32 %v2409_v30, %v333_v15  ;;  %1019 = vmatpush.msrb.mxu3 %v260_v13  ;;  %954 = vmatpush.msrb.mxu2 %v259_v12  ;;  %v235_v12 = vld [vmem:[#allocation5 + $0x470] sm:$0xff] }
  0xc2   :  { %486 = vmatmul.f32.gmra.mxu2 %v2325_v31  ;;  %v1531_v26 = vadd.f32 %v2413_v52, %v1293_v18  ;;  %v1583_v27 = vadd.f32 %v2413_v52, %v1345_v19  ;;  %v2467_v18 = vperm.slane %v2401_v43, 1  ;;  %v2477_v19 = vperm.slane %v2401_v43, 4  ;;  %1085 = vmatpush.msrb.mxu0 %v248_v55 }
  0xc3   :  { %551 = vmatmul.f32.gmra.mxu3 %v2325_v31  ;;  %v1427_v17 = vadd.f32 %v2413_v52, %v1189_v20  ;;  %v1479_v23 = vadd.f32 %v2413_v52, %v1241_v21  ;;  %v2480_v20 = vperm.slane %v2405_v46, 1  ;;  %v2483_v21 = vperm.slane %v2405_v46, 2 }
  0xc4   :  { %v1739_v28 = vmax.f32 %v1531_v26, 0.0  ;;  %v1791_v45 = vmax.f32 %v1583_v27, 0.0  ;;  %1086 = vmatpush.msrb.mxu0 %v235_v12 }
  0xc5   :  { %v1635_v29 = vmax.f32 %v1427_v17, 0.0  ;;  %v1687_v32 = vmax.f32 %v1479_v23, 0.0  ;;  %v2486_v17 = vperm.slane %v2405_v46, 3  ;;  %v2489_v23 = vperm.slane %v2405_v46, 4  ;;  %v246_v46 = vld [vmem:[#allocation5 + $0x4c8] sm:$0xff] }
  0xc6   :  { %1947 = vst [vmem:[#allocation10 + $0x3a8] sm:$0xff] %v1739_v28  ;;  %955 = vmatpush.msrb.mxu2 %v246_v46 }
  0xc7   :  { %1843 = vst [vmem:[#allocation10 + $0x68] sm:$0xff] %v1635_v29 }
  0xc8   :  { %1895 = vst [vmem:[#allocation10 + $0x208] sm:$0xff] %v1687_v32  ;;  %421 = vmatmul.f32.gmra.mxu1 %v2325_v31  ;;  %616 = vmatmul.f32.gmra.mxu0 %v2325_v31 }
  0xc9   :  { %1999 = vst [vmem:[#allocation10 + $0x548] sm:$0xff] %v1791_v45  ;;  %v348_v36 = vpop.f32.mrf.mxu2  ;;  %v360_v37 = vpop.f32.mrf.mxu3  ;;  %956 = vmatpush.msrb.mxu2 %v233_v58 }
  0xca   :  { %489 = vmatmul.f32.gmra.mxu2 %v2337_v51  ;;  %v324_v38 = vpop.f32.mrf.mxu0  ;;  %v336_v25 = vpop.f32.mrf.mxu1  ;;  %v1306_v39 = vmul.f32 %v2409_v30, %v348_v36  ;;  %v1358_v40 = vmul.f32 %v2409_v30, %v360_v37  ;;  %v247_v37 = vld [vmem:[#allocation5 + $0x4d0] sm:$0xff] }
  0xcb   :  { %554 = vmatmul.f32.gmra.mxu3 %v2337_v51  ;;  %v1202_v31 = vmul.f32 %v2409_v30, %v324_v38  ;;  %v1254_v41 = vmul.f32 %v2409_v30, %v336_v25 }
  0xcc   :  { %v1544_v16 = vadd.f32 %v2413_v52, %v1306_v39  ;;  %v1596_v42 = vadd.f32 %v2413_v52, %v1358_v40  ;;  %1020 = vmatpush.msrb.mxu3 %v247_v37  ;;  %v219_v37 = vld [vmem:[#allocation5 + $0x3f0] sm:$0xff] }
  0xcd   :  { %v1440_v47 = vadd.f32 %v2413_v52, %v1202_v31  ;;  %v1492_v48 = vadd.f32 %v2413_v52, %v1254_v41 }
  0xce   :  { %v1752_v49 = vmax.f32 %v1544_v16, 0.0  ;;  %v1804_v50 = vmax.f32 %v1596_v42, 0.0 }
  0xcf   :  { %v1648_v53 = vmax.f32 %v1440_v47, 0.0  ;;  %v1700_v54 = vmax.f32 %v1492_v48, 0.0 }
  0xd0   :  { %1960 = vst [vmem:[#allocation10 + $0x410] sm:$0xff] %v1752_v49  ;;  %424 = vmatmul.f32.gmra.mxu1 %v2337_v51  ;;  %619 = vmatmul.f32.gmra.mxu0 %v2337_v51 }
  0xd1   :  { %1856 = vst [vmem:[#allocation10 + $0xd0] sm:$0xff] %v1648_v53 }
  0xd2   :  { %1908 = vst [vmem:[#allocation10 + $0x270] sm:$0xff] %v1700_v54  ;;  %492 = vmatmul.f32.gmra.mxu2 %v2349_v7 }
  0xd3   :  { %2012 = vst [vmem:[#allocation10 + $0x5b0] sm:$0xff] %v1804_v50  ;;  %557 = vmatmul.f32.gmra.mxu3 %v2349_v7  ;;  %v351_v59 = vpop.f32.mrf.mxu2  ;;  %v363_v60 = vpop.f32.mrf.mxu3  ;;  %v245_v50 = vld [vmem:[#allocation5 + $0x4c0] sm:$0xff] }
  0xd4   :  { %v327_v61 = vpop.f32.mrf.mxu0  ;;  %v339_v62 = vpop.f32.mrf.mxu1  ;;  %v1319_v63 = vmul.f32 %v2409_v30, %v351_v59  ;;  %v1371_v51 = vmul.f32 %v2409_v30, %v363_v60  ;;  %v234_v59 = vld [vmem:[#allocation5 + $0x468] sm:$0xff]  ;;  %890 = vmatpush.msrb.mxu1 %v245_v50 }
  0xd5   :  { %v1215_v2 = vmul.f32 %v2409_v30, %v327_v61  ;;  %v1267_v3 = vmul.f32 %v2409_v30, %v339_v62  ;;  %1021 = vmatpush.msrb.mxu3 %v234_v59  ;;  %v206_v59 = vld [vmem:[#allocation5 + $0x388] sm:$0xff] }
  0xd6   :  { %v1557_v4 = vadd.f32 %v2413_v52, %v1319_v63  ;;  %v1609_v6 = vadd.f32 %v2413_v52, %v1371_v51 }
  0xd7   :  { %v1453_v5 = vadd.f32 %v2413_v52, %v1215_v2  ;;  %v1505_v8 = vadd.f32 %v2413_v52, %v1267_v3  ;;  %v2470_v52 = vperm.slane %v2401_v43, 2 }
  0xd8   :  { %v1765_v11 = vmax.f32 %v1557_v4, 0.0  ;;  %427 = vmatmul.f32.gmra.mxu1 %v2349_v7  ;;  %622 = vmatmul.f32.gmra.mxu0 %v2349_v7  ;;  %v1817_v30 = vmax.f32 %v1609_v6, 0.0  ;;  %v2474_v7 = vperm.slane %v2401_v43, 3 }
  0xd9   :  { %v1661_v14 = vmax.f32 %v1453_v5, 0.0  ;;  %v1713_v15 = vmax.f32 %v1505_v8, 0.0 }
  0xda   :  { %1973 = vst [vmem:[#allocation10 + $0x478] sm:$0xff] %v1765_v11  ;;  %707 = vmatmul.f32.vlgmr.msra.gmra.mxu2 %v2317_v22  ;;  %v232_v11 = vld [vmem:[#allocation5 + $0x458] sm:$0xff] }
  0xdb   :  { %1869 = vst [vmem:[#allocation10 + $0x138] sm:$0xff] %v1661_v14  ;;  %772 = vmatmul.f32.vlgmr.msra.gmra.mxu3 %v2317_v22  ;;  %891 = vmatpush.msrb.mxu1 %v232_v11 }
  0xdc   :  { %1921 = vst [vmem:[#allocation10 + $0x2d8] sm:$0xff] %v1713_v15  ;;  %v220_v15 = vld [vmem:[#allocation5 + $0x3f8] sm:$0xff] }
  0xdd   :  { %2025 = vst [vmem:[#allocation10 + $0x618] sm:$0xff] %v1817_v30  ;;  %v383_v26 = vpop.f32.mrf.mxu1  ;;  %v448_v27 = vpop.f32.mrf.mxu2  ;;  %v221_v30 = vld [vmem:[#allocation5 + $0x400] sm:$0xff]  ;;  %957 = vmatpush.msrb.mxu2 %v220_v15  ;;  %892 = vmatpush.msrb.mxu1 %v219_v37 }
  0xde   :  { %v1177_v43 = vmul.f32 %v2467_v18, %v383_v26  ;;  %v1178_v28 = vmul.f32 %v2470_v52, %v448_v27  ;;  %v513_v29 = vpop.f32.mrf.mxu3  ;;  %v578_v32 = vpop.f32.mrf.mxu0  ;;  %1022 = vmatpush.msrb.mxu3 %v221_v30 }
  0xdf   :  { %v1179_v45 = vmul.f32 %v2474_v7, %v513_v29  ;;  %v1180_v33 = vmul.f32 %v2477_v19, %v578_v32  ;;  %893 = vmatpush.msrb.mxu1 %v206_v59 }
  0xe0   :  { %v1415_v1 = vadd.f32 %v2480_v20, %v1177_v43  ;;  %v1416_v36 = vadd.f32 %v2483_v21, %v1178_v28  ;;  %642 = vmatmul.f32.vlgmr.msra.gmra.mxu1 %v2317_v22  ;;  %837 = vmatmul.f32.vlgmr.msra.gmra.mxu0 %v2317_v22 }
  0xe1   :  { %v1417_v38 = vadd.f32 %v2486_v17, %v1179_v45  ;;  %v1418_v25 = vadd.f32 %v2489_v23, %v1180_v33 }
  0xe2   :  { %v1623_v39 = vmax.f32 %v1415_v1, 0.0  ;;  %v1624_v40 = vmax.f32 %v1416_v36, 0.0  ;;  %710 = vmatmul.f32.gmra.mxu2 %v2329_v44 }
  0xe3   :  { %v1625_v31 = vmax.f32 %v1417_v38, 0.0  ;;  %v1626_v41 = vmax.f32 %v1418_v25, 0.0  ;;  %775 = vmatmul.f32.gmra.mxu3 %v2329_v44  ;;  %v222_v38 = vld [vmem:[#allocation5 + $0x408] sm:$0xff] }
  0xe4   :  { %1831 = vst [vmem:[#allocation10 + $0x8] sm:$0xff] %v1623_v39  ;;  %1087 = vmatpush.msrb.mxu0 %v222_v38 }
  0xe5   :  { %1832 = vst [vmem:[#allocation10 + $0x10] sm:$0xff] %v1624_v40  ;;  %v386_v22 = vpop.f32.mrf.mxu1  ;;  %v451_v16 = vpop.f32.mrf.mxu2  ;;  %v207_v40 = vld [vmem:[#allocation5 + $0x390] sm:$0xff] }
  0xe6   :  { %1833 = vst [vmem:[#allocation10 + $0x18] sm:$0xff] %v1625_v31  ;;  %v1190_v42 = vmul.f32 %v2467_v18, %v386_v22  ;;  %v1191_v47 = vmul.f32 %v2470_v52, %v451_v16  ;;  %v516_v48 = vpop.f32.mrf.mxu3  ;;  %v581_v49 = vpop.f32.mrf.mxu0  ;;  %v208_v31 = vld [vmem:[#allocation5 + $0x398] sm:$0xff]  ;;  %958 = vmatpush.msrb.mxu2 %v207_v40 }
  0xe7   :  { %1834 = vst [vmem:[#allocation10 + $0x20] sm:$0xff] %v1626_v41  ;;  %v1192_v53 = vmul.f32 %v2474_v7, %v516_v48  ;;  %v1193_v54 = vmul.f32 %v2477_v19, %v581_v49  ;;  %1023 = vmatpush.msrb.mxu3 %v208_v31 }
  0xe8   :  { %v1428_v56 = vadd.f32 %v2480_v20, %v1190_v42  ;;  %v1429_v57 = vadd.f32 %v2483_v21, %v1191_v47  ;;  %645 = vmatmul.f32.gmra.mxu1 %v2329_v44  ;;  %840 = vmatmul.f32.gmra.mxu0 %v2329_v44  ;;  %v2537_v47 = vld [vmem:[#allocation2 + $0x20] sm:$0xff] }
  0xe9   :  { %v1430_v60 = vadd.f32 %v2486_v17, %v1192_v53  ;;  %v1431_v61 = vadd.f32 %v2489_v23, %v1193_v54 }
  0xea   :  { %v1636_v62 = vmax.f32 %v1428_v56, 0.0  ;;  %v1637_v63 = vmax.f32 %v1429_v57, 0.0  ;;  %713 = vmatmul.f32.gmra.mxu2 %v2341_v0 }
  0xeb   :  { %v1638_v51 = vmax.f32 %v1430_v60, 0.0  ;;  %v1639_v2 = vmax.f32 %v1431_v61, 0.0  ;;  %778 = vmatmul.f32.gmra.mxu3 %v2341_v0  ;;  %v209_v60 = vld [vmem:[#allocation5 + $0x3a0] sm:$0xff] }
  0xec   :  { %1844 = vst [vmem:[#allocation10 + $0x70] sm:$0xff] %v1636_v62  ;;  %1088 = vmatpush.msrb.mxu0 %v209_v60 }
  0xed   :  { %1845 = vst [vmem:[#allocation10 + $0x78] sm:$0xff] %v1637_v63  ;;  %v389_v44 = vpop.f32.mrf.mxu1  ;;  %v454_v3 = vpop.f32.mrf.mxu2  ;;  %v194_v63 = vld [vmem:[#allocation5 + $0x328] sm:$0xff] }
  0xee   :  { %1846 = vst [vmem:[#allocation10 + $0x80] sm:$0xff] %v1638_v51  ;;  %v1203_v4 = vmul.f32 %v2467_v18, %v389_v44  ;;  %v1204_v6 = vmul.f32 %v2470_v52, %v454_v3  ;;  %v519_v5 = vpop.f32.mrf.mxu3  ;;  %v584_v8 = vpop.f32.mrf.mxu0  ;;  %v195_v51 = vld [vmem:[#allocation5 + $0x330] sm:$0xff]  ;;  %959 = vmatpush.msrb.mxu2 %v194_v63 }
  0xef   :  { %1847 = vst [vmem:[#allocation10 + $0x88] sm:$0xff] %v1639_v2  ;;  %v1205_v9 = vmul.f32 %v2474_v7, %v519_v5  ;;  %v1206_v10 = vmul.f32 %v2477_v19, %v584_v8  ;;  %1024 = vmatpush.msrb.mxu3 %v195_v51 }
  0xf0   :  { %v1441_v13 = vadd.f32 %v2480_v20, %v1203_v4  ;;  %v1442_v14 = vadd.f32 %v2483_v21, %v1204_v6  ;;  %648 = vmatmul.f32.gmra.mxu1 %v2341_v0  ;;  %843 = vmatmul.f32.gmra.mxu0 %v2341_v0  ;;  %v2551_v6 = vld [vmem:[#allocation2 + $0x28] sm:$0xff] }
  0xf1   :  { %v1443_v26 = vadd.f32 %v2486_v17, %v1205_v9  ;;  %v1444_v27 = vadd.f32 %v2489_v23, %v1206_v10 }
  0xf2   :  { %v1649_v43 = vmax.f32 %v1441_v13, 0.0  ;;  %v1650_v28 = vmax.f32 %v1442_v14, 0.0  ;;  %716 = vmatmul.f32.gmra.mxu2 %v2353_v24 }
  0xf3   :  { %v1651_v29 = vmax.f32 %v1443_v26, 0.0  ;;  %v1652_v32 = vmax.f32 %v1444_v27, 0.0  ;;  %781 = vmatmul.f32.gmra.mxu3 %v2353_v24  ;;  %v193_v26 = vld [vmem:[#allocation5 + $0x320] sm:$0xff]  ;;  %v196_v27 = vld [vmem:[#allocation5 + $0x338] sm:$0xff] }
  0xf4   :  { %1857 = vst [vmem:[#allocation10 + $0xd8] sm:$0xff] %v1649_v43  ;;  %894 = vmatpush.msrb.mxu1 %v193_v26  ;;  %1089 = vmatpush.msrb.mxu0 %v196_v27 }
  0xf5   :  { %1858 = vst [vmem:[#allocation10 + $0xe0] sm:$0xff] %v1650_v28  ;;  %v392_v0 = vpop.f32.mrf.mxu1  ;;  %v457_v45 = vpop.f32.mrf.mxu2 }
  0xf6   :  { %1859 = vst [vmem:[#allocation10 + $0xe8] sm:$0xff] %v1651_v29  ;;  %v1216_v33 = vmul.f32 %v2467_v18, %v392_v0  ;;  %v1217_v34 = vmul.f32 %v2470_v52, %v457_v45  ;;  %v522_v35 = vpop.f32.mrf.mxu3  ;;  %v587_v1 = vpop.f32.mrf.mxu0  ;;  %v181_v29 = vld [vmem:[#allocation5 + $0x2c0] sm:$0xff] }
  0xf7   :  { %1860 = vst [vmem:[#allocation10 + $0xf0] sm:$0xff] %v1652_v32  ;;  %v1218_v36 = vmul.f32 %v2474_v7, %v522_v35  ;;  %v1219_v46 = vmul.f32 %v2477_v19, %v587_v1  ;;  %v182_v32 = vld [vmem:[#allocation5 + $0x2c8] sm:$0xff]  ;;  %v2565_v35 = vld [vmem:[#allocation2 + $0x30] sm:$0xff]  ;;  %960 = vmatpush.msrb.mxu2 %v181_v29 }
  0xf8   :  { %v1454_v25 = vadd.f32 %v2480_v20, %v1216_v33  ;;  %v1455_v39 = vadd.f32 %v2483_v21, %v1217_v34  ;;  %651 = vmatmul.f32.gmra.mxu1 %v2353_v24  ;;  %846 = vmatmul.f32.gmra.mxu0 %v2353_v24 }
  0xf9   :  { %v1456_v41 = vadd.f32 %v2486_v17, %v1218_v36  ;;  %v1457_v22 = vadd.f32 %v2489_v23, %v1219_v46  ;;  %1025 = vmatpush.msrb.mxu3 %v182_v32 }
  0xfa   :  { %v1662_v16 = vmax.f32 %v1454_v25, 0.0  ;;  %v1663_v42 = vmax.f32 %v1455_v39, 0.0  ;;  %719 = vmatmul.f32.gmra.mxu2 %v2537_v47 }
  0xfb   :  { %v1664_v48 = vmax.f32 %v1456_v41, 0.0  ;;  %v1665_v49 = vmax.f32 %v1457_v22, 0.0  ;;  %784 = vmatmul.f32.gmra.mxu3 %v2537_v47  ;;  %v180_v22 = vld [vmem:[#allocation5 + $0x2b8] sm:$0xff] }
  0xfc   :  { %1870 = vst [vmem:[#allocation10 + $0x140] sm:$0xff] %v1662_v16  ;;  %v183_v16 = vld [vmem:[#allocation5 + $0x2d0] sm:$0xff]  ;;  %895 = vmatpush.msrb.mxu1 %v180_v22 }
  0xfd   :  { %1871 = vst [vmem:[#allocation10 + $0x148] sm:$0xff] %v1663_v42  ;;  %v395_v24 = vpop.f32.mrf.mxu1  ;;  %v460_v53 = vpop.f32.mrf.mxu2  ;;  %1090 = vmatpush.msrb.mxu0 %v183_v16 }
  0xfe   :  { %1872 = vst [vmem:[#allocation10 + $0x150] sm:$0xff] %v1664_v48  ;;  %v1229_v54 = vmul.f32 %v2467_v18, %v395_v24  ;;  %v1230_v50 = vmul.f32 %v2470_v52, %v460_v53  ;;  %v525_v55 = vpop.f32.mrf.mxu3  ;;  %v590_v56 = vpop.f32.mrf.mxu0  ;;  %v169_v24 = vld [vmem:[#allocation5 + $0x260] sm:$0xff] }
  0xff   :  { %1873 = vst [vmem:[#allocation10 + $0x158] sm:$0xff] %v1665_v49  ;;  %v1231_v57 = vmul.f32 %v2474_v7, %v525_v55  ;;  %v1232_v58 = vmul.f32 %v2477_v19, %v590_v56  ;;  %v168_v49 = vld [vmem:[#allocation5 + $0x258] sm:$0xff]  ;;  %1026 = vmatpush.msrb.mxu3 %v169_v24 }
 0x100   :  { %v1467_v61 = vadd.f32 %v2480_v20, %v1229_v54  ;;  %v1468_v62 = vadd.f32 %v2483_v21, %v1230_v50  ;;  %654 = vmatmul.f32.gmra.mxu1 %v2537_v47  ;;  %849 = vmatmul.f32.gmra.mxu0 %v2537_v47  ;;  %v2579_v56 = vld [vmem:[#allocation2 + $0x38] sm:$0xff] }
 0x101   :  { %v1469_v2 = vadd.f32 %v2486_v17, %v1231_v57  ;;  %v1470_v44 = vadd.f32 %v2489_v23, %v1232_v58  ;;  %961 = vmatpush.msrb.mxu2 %v168_v49 }
 0x102   :  { %v1675_v3 = vmax.f32 %v1467_v61, 0.0  ;;  %v1676_v4 = vmax.f32 %v1468_v62, 0.0  ;;  %722 = vmatmul.f32.gmra.mxu2 %v2551_v6 }
 0x103   :  { %v1677_v5 = vmax.f32 %v1469_v2, 0.0  ;;  %v1678_v8 = vmax.f32 %v1470_v44, 0.0  ;;  %787 = vmatmul.f32.gmra.mxu3 %v2551_v6 }
 0x104   :  { %1883 = vst [vmem:[#allocation10 + $0x1a8] sm:$0xff] %v1675_v3  ;;  %v167_v3 = vld [vmem:[#allocation5 + $0x250] sm:$0xff] }
 0x105   :  { %1884 = vst [vmem:[#allocation10 + $0x1b0] sm:$0xff] %v1676_v4  ;;  %v398_v9 = vpop.f32.mrf.mxu1  ;;  %v463_v10 = vpop.f32.mrf.mxu2  ;;  %v170_v4 = vld [vmem:[#allocation5 + $0x268] sm:$0xff]  ;;  %896 = vmatpush.msrb.mxu1 %v167_v3  ;;  %v2621_v3 = vld [vmem:[#allocation2 + $0x50] sm:$0xff] }
 0x106   :  { %1885 = vst [vmem:[#allocation10 + $0x1b8] sm:$0xff] %v1677_v5  ;;  %v1242_v11 = vmul.f32 %v2467_v18, %v398_v9  ;;  %v1243_v12 = vmul.f32 %v2470_v52, %v463_v10  ;;  %v528_v13 = vpop.f32.mrf.mxu3  ;;  %v593_v14 = vpop.f32.mrf.mxu0  ;;  %v155_v9 = vld [vmem:[#allocation5 + $0x1f0] sm:$0xff]  ;;  %v156_v10 = vld [vmem:[#allocation5 + $0x1f8] sm:$0xff]  ;;  %1091 = vmatpush.msrb.mxu0 %v170_v4 }
 0x107   :  { %1886 = vst [vmem:[#allocation10 + $0x1c0] sm:$0xff] %v1678_v8  ;;  %v1244_v15 = vmul.f32 %v2474_v7, %v528_v13  ;;  %v1245_v30 = vmul.f32 %v2477_v19, %v593_v14  ;;  %1027 = vmatpush.msrb.mxu3 %v156_v10  ;;  %962 = vmatpush.msrb.mxu2 %v155_v9 }
 0x108   :  { %v1480_v43 = vadd.f32 %v2480_v20, %v1242_v11  ;;  %v1481_v28 = vadd.f32 %v2483_v21, %v1243_v12  ;;  %657 = vmatmul.f32.gmra.mxu1 %v2551_v6  ;;  %852 = vmatmul.f32.gmra.mxu0 %v2551_v6 }
 0x109   :  { %v1482_v0 = vadd.f32 %v2486_v17, %v1244_v15  ;;  %v1483_v45 = vadd.f32 %v2489_v23, %v1245_v30  ;;  %v2593_v15 = vld [vmem:[#allocation2 + $0x40] sm:$0xff] }
 0x10a   :  { %v1688_v33 = vmax.f32 %v1480_v43, 0.0  ;;  %v1689_v34 = vmax.f32 %v1481_v28, 0.0  ;;  %725 = vmatmul.f32.gmra.mxu2 %v2565_v35 }
 0x10b   :  { %v1690_v1 = vmax.f32 %v1482_v0, 0.0  ;;  %v1691_v36 = vmax.f32 %v1483_v45, 0.0  ;;  %790 = vmatmul.f32.gmra.mxu3 %v2565_v35 }
 0x10c   :  { %1896 = vst [vmem:[#allocation10 + $0x210] sm:$0xff] %v1688_v33 }
 0x10d   :  { %1897 = vst [vmem:[#allocation10 + $0x218] sm:$0xff] %v1689_v34  ;;  %v401_v46 = vpop.f32.mrf.mxu1  ;;  %v466_v37 = vpop.f32.mrf.mxu2  ;;  %v154_v34 = vld [vmem:[#allocation5 + $0x1e8] sm:$0xff] }
 0x10e   :  { %1898 = vst [vmem:[#allocation10 + $0x220] sm:$0xff] %v1690_v1  ;;  %v1255_v38 = vmul.f32 %v2467_v18, %v401_v46  ;;  %v1256_v25 = vmul.f32 %v2470_v52, %v466_v37  ;;  %v531_v39 = vpop.f32.mrf.mxu3  ;;  %v596_v40 = vpop.f32.mrf.mxu0  ;;  %v157_v1 = vld [vmem:[#allocation5 + $0x200] sm:$0xff]  ;;  %v142_v37 = vld [vmem:[#allocation5 + $0x188] sm:$0xff]  ;;  %897 = vmatpush.msrb.mxu1 %v154_v34 }
 0x10f   :  { %1899 = vst [vmem:[#allocation10 + $0x228] sm:$0xff] %v1691_v36  ;;  %v1257_v31 = vmul.f32 %v2474_v7, %v531_v39  ;;  %v1258_v41 = vmul.f32 %v2477_v19, %v596_v40  ;;  %1092 = vmatpush.msrb.mxu0 %v157_v1  ;;  %963 = vmatpush.msrb.mxu2 %v142_v37  ;;  %v2635_v1 = vld [vmem:[#allocation2 + $0x58] sm:$0xff] }
 0x110   :  { %v1493_v42 = vadd.f32 %v2480_v20, %v1255_v38  ;;  %v1494_v48 = vadd.f32 %v2483_v21, %v1256_v25  ;;  %660 = vmatmul.f32.gmra.mxu1 %v2565_v35  ;;  %855 = vmatmul.f32.gmra.mxu0 %v2565_v35  ;;  %v143_v38 = vld [vmem:[#allocation5 + $0x190] sm:$0xff] }
 0x111   :  { %v1495_v53 = vadd.f32 %v2486_v17, %v1257_v31  ;;  %v1496_v54 = vadd.f32 %v2489_v23, %v1258_v41  ;;  %v2607_v41 = vld [vmem:[#allocation2 + $0x48] sm:$0xff]  ;;  %1028 = vmatpush.msrb.mxu3 %v143_v38 }
 0x112   :  { %v1701_v50 = vmax.f32 %v1493_v42, 0.0  ;;  %v1702_v55 = vmax.f32 %v1494_v48, 0.0  ;;  %728 = vmatmul.f32.gmra.mxu2 %v2579_v56 }
 0x113   :  { %v1703_v57 = vmax.f32 %v1495_v53, 0.0  ;;  %v1704_v58 = vmax.f32 %v1496_v54, 0.0  ;;  %793 = vmatmul.f32.gmra.mxu3 %v2579_v56 }
 0x114   :  { %1909 = vst [vmem:[#allocation10 + $0x278] sm:$0xff] %v1701_v50 }
 0x115   :  { %1910 = vst [vmem:[#allocation10 + $0x280] sm:$0xff] %v1702_v55  ;;  %v404_v59 = vpop.f32.mrf.mxu1  ;;  %v469_v60 = vpop.f32.mrf.mxu2 }
 0x116   :  { %1911 = vst [vmem:[#allocation10 + $0x288] sm:$0xff] %v1703_v57  ;;  %v1268_v61 = vmul.f32 %v2467_v18, %v404_v59  ;;  %v1269_v62 = vmul.f32 %v2470_v52, %v469_v60  ;;  %v534_v63 = vpop.f32.mrf.mxu3  ;;  %v599_v51 = vpop.f32.mrf.mxu0  ;;  %v141_v57 = vld [vmem:[#allocation5 + $0x180] sm:$0xff] }
 0x117   :  { %1912 = vst [vmem:[#allocation10 + $0x290] sm:$0xff] %v1704_v58  ;;  %v1270_v2 = vmul.f32 %v2474_v7, %v534_v63  ;;  %v1271_v44 = vmul.f32 %v2477_v19, %v599_v51  ;;  %v144_v58 = vld [vmem:[#allocation5 + $0x198] sm:$0xff]  ;;  %898 = vmatpush.msrb.mxu1 %v141_v57 }
 0x118   :  { %v1506_v5 = vadd.f32 %v2480_v20, %v1268_v61  ;;  %v1507_v8 = vadd.f32 %v2483_v21, %v1269_v62  ;;  %663 = vmatmul.f32.gmra.mxu1 %v2579_v56  ;;  %858 = vmatmul.f32.gmra.mxu0 %v2579_v56  ;;  %v129_v61 = vld [vmem:[#allocation5 + $0x120] sm:$0xff]  ;;  %v130_v62 = vld [vmem:[#allocation5 + $0x128] sm:$0xff] }
 0x119   :  { %v1508_v11 = vadd.f32 %v2486_v17, %v1270_v2  ;;  %v1509_v12 = vadd.f32 %v2489_v23, %v1271_v44  ;;  %1093 = vmatpush.msrb.mxu0 %v144_v58  ;;  %1029 = vmatpush.msrb.mxu3 %v130_v62 }
 0x11a   :  { %v1714_v13 = vmax.f32 %v1506_v5, 0.0  ;;  %v1715_v14 = vmax.f32 %v1507_v8, 0.0  ;;  %731 = vmatmul.f32.gmra.mxu2 %v2593_v15 }
 0x11b   :  { %v1716_v30 = vmax.f32 %v1508_v11, 0.0  ;;  %v1717_v26 = vmax.f32 %v1509_v12, 0.0  ;;  %796 = vmatmul.f32.gmra.mxu3 %v2593_v15  ;;  %964 = vmatpush.msrb.mxu2 %v129_v61 }
 0x11c   :  { %1922 = vst [vmem:[#allocation10 + $0x2e0] sm:$0xff] %v1714_v13 }
 0x11d   :  { %1923 = vst [vmem:[#allocation10 + $0x2e8] sm:$0xff] %v1715_v14  ;;  %v407_v27 = vpop.f32.mrf.mxu1  ;;  %v472_v43 = vpop.f32.mrf.mxu2 }
 0x11e   :  { %1924 = vst [vmem:[#allocation10 + $0x2f0] sm:$0xff] %v1716_v30  ;;  %v1281_v28 = vmul.f32 %v2467_v18, %v407_v27  ;;  %v1282_v29 = vmul.f32 %v2470_v52, %v472_v43  ;;  %v537_v32 = vpop.f32.mrf.mxu3  ;;  %v602_v0 = vpop.f32.mrf.mxu0  ;;  %v131_v27 = vld [vmem:[#allocation5 + $0x130] sm:$0xff] }
 0x11f   :  { %1925 = vst [vmem:[#allocation10 + $0x2f8] sm:$0xff] %v1717_v26  ;;  %v1283_v45 = vmul.f32 %v2474_v7, %v537_v32  ;;  %v1284_v33 = vmul.f32 %v2477_v19, %v602_v0  ;;  %v128_v26 = vld [vmem:[#allocation5 + $0x118] sm:$0xff]  ;;  %v117_v32 = vld [vmem:[#allocation5 + $0xc0] sm:$0xff]  ;;  %1094 = vmatpush.msrb.mxu0 %v131_v27  ;;  %v2663_v27 = vld [vmem:[#allocation2 + $0x68] sm:$0xff] }
 0x120   :  { %v1519_v36 = vadd.f32 %v2480_v20, %v1281_v28  ;;  %v1520_v46 = vadd.f32 %v2483_v21, %v1282_v29  ;;  %666 = vmatmul.f32.gmra.mxu1 %v2593_v15  ;;  %861 = vmatmul.f32.gmra.mxu0 %v2593_v15  ;;  %v116_v29 = vld [vmem:[#allocation5 + $0xb8] sm:$0xff] }
 0x121   :  { %v1521_v25 = vadd.f32 %v2486_v17, %v1283_v45  ;;  %v1522_v39 = vadd.f32 %v2489_v23, %v1284_v33  ;;  %899 = vmatpush.msrb.mxu1 %v128_v26  ;;  %1030 = vmatpush.msrb.mxu3 %v117_v32 }
 0x122   :  { %v1727_v40 = vmax.f32 %v1519_v36, 0.0  ;;  %v1728_v31 = vmax.f32 %v1520_v46, 0.0  ;;  %734 = vmatmul.f32.gmra.mxu2 %v2607_v41 }
 0x123   :  { %v1729_v22 = vmax.f32 %v1521_v25, 0.0  ;;  %v1730_v16 = vmax.f32 %v1522_v39, 0.0  ;;  %799 = vmatmul.f32.gmra.mxu3 %v2607_v41  ;;  %965 = vmatpush.msrb.mxu2 %v116_v29 }
 0x124   :  { %1935 = vst [vmem:[#allocation10 + $0x348] sm:$0xff] %v1727_v40 }
 0x125   :  { %1936 = vst [vmem:[#allocation10 + $0x350] sm:$0xff] %v1728_v31  ;;  %v410_v42 = vpop.f32.mrf.mxu1  ;;  %v475_v48 = vpop.f32.mrf.mxu2 }
 0x126   :  { %1937 = vst [vmem:[#allocation10 + $0x358] sm:$0xff] %v1729_v22  ;;  %v1294_v49 = vmul.f32 %v2467_v18, %v410_v42  ;;  %v1295_v24 = vmul.f32 %v2470_v52, %v475_v48  ;;  %v540_v53 = vpop.f32.mrf.mxu3  ;;  %v605_v54 = vpop.f32.mrf.mxu0  ;;  %v115_v42 = vld [vmem:[#allocation5 + $0xb0] sm:$0xff]  ;;  %v118_v48 = vld [vmem:[#allocation5 + $0xc8] sm:$0xff] }
 0x127   :  { %1938 = vst [vmem:[#allocation10 + $0x360] sm:$0xff] %v1730_v16  ;;  %v1296_v50 = vmul.f32 %v2474_v7, %v540_v53  ;;  %v1297_v55 = vmul.f32 %v2477_v19, %v605_v54  ;;  %v103_v53 = vld [vmem:[#allocation5 + $0x50] sm:$0xff]  ;;  %v104_v54 = vld [vmem:[#allocation5 + $0x58] sm:$0xff]  ;;  %900 = vmatpush.msrb.mxu1 %v115_v42  ;;  %1095 = vmatpush.msrb.mxu0 %v118_v48 }
 0x128   :  { %v1532_v59 = vadd.f32 %v2480_v20, %v1294_v49  ;;  %v1533_v60 = vadd.f32 %v2483_v21, %v1295_v24  ;;  %669 = vmatmul.f32.gmra.mxu1 %v2607_v41  ;;  %864 = vmatmul.f32.gmra.mxu0 %v2607_v41 }
 0x129   :  { %v1534_v63 = vadd.f32 %v2486_v17, %v1296_v50  ;;  %v1535_v51 = vadd.f32 %v2489_v23, %v1297_v55  ;;  %1031 = vmatpush.msrb.mxu3 %v104_v54  ;;  %966 = vmatpush.msrb.mxu2 %v103_v53 }
 0x12a   :  { %v1740_v2 = vmax.f32 %v1532_v59, 0.0  ;;  %v1741_v44 = vmax.f32 %v1533_v60, 0.0  ;;  %737 = vmatmul.f32.gmra.mxu2 %v2621_v3  ;;  %v2649_v59 = vld [vmem:[#allocation2 + $0x60] sm:$0xff] }
 0x12b   :  { %v1742_v4 = vmax.f32 %v1534_v63, 0.0  ;;  %v1743_v5 = vmax.f32 %v1535_v51, 0.0  ;;  %802 = vmatmul.f32.gmra.mxu3 %v2621_v3 }
 0x12c   :  { %1948 = vst [vmem:[#allocation10 + $0x3b0] sm:$0xff] %v1740_v2 }
 0x12d   :  { %1949 = vst [vmem:[#allocation10 + $0x3b8] sm:$0xff] %v1741_v44  ;;  %v413_v8 = vpop.f32.mrf.mxu1  ;;  %v478_v9 = vpop.f32.mrf.mxu2 }
 0x12e   :  { %1950 = vst [vmem:[#allocation10 + $0x3c0] sm:$0xff] %v1742_v4  ;;  %v1307_v10 = vmul.f32 %v2467_v18, %v413_v8  ;;  %v1308_v11 = vmul.f32 %v2470_v52, %v478_v9  ;;  %v543_v12 = vpop.f32.mrf.mxu3  ;;  %v608_v13 = vpop.f32.mrf.mxu0  ;;  %v102_v9 = vld [vmem:[#allocation5 + $0x48] sm:$0xff] }
 0x12f   :  { %1951 = vst [vmem:[#allocation10 + $0x3c8] sm:$0xff] %v1743_v5  ;;  %v1309_v14 = vmul.f32 %v2474_v7, %v543_v12  ;;  %v1310_v30 = vmul.f32 %v2477_v19, %v608_v13  ;;  %901 = vmatpush.msrb.mxu1 %v102_v9 }
 0x130   :  { %v1545_v43 = vadd.f32 %v2480_v20, %v1307_v10  ;;  %v1546_v28 = vadd.f32 %v2483_v21, %v1308_v11  ;;  %672 = vmatmul.f32.gmra.mxu1 %v2621_v3  ;;  %867 = vmatmul.f32.gmra.mxu0 %v2621_v3  ;;  %v105_v10 = vld [vmem:[#allocation5 + $0x60] sm:$0xff] }
 0x131   :  { %v1547_v0 = vadd.f32 %v2486_v17, %v1309_v14  ;;  %v1548_v45 = vadd.f32 %v2489_v23, %v1310_v30  ;;  %1096 = vmatpush.msrb.mxu0 %v105_v10 }
 0x132   :  { %v1753_v33 = vmax.f32 %v1545_v43, 0.0  ;;  %v1754_v34 = vmax.f32 %v1546_v28, 0.0  ;;  %740 = vmatmul.f32.gmra.mxu2 %v2635_v1 }
 0x133   :  { %v1755_v36 = vmax.f32 %v1547_v0, 0.0  ;;  %v1756_v46 = vmax.f32 %v1548_v45, 0.0  ;;  %805 = vmatmul.f32.gmra.mxu3 %v2635_v1 }
 0x134   :  { %1961 = vst [vmem:[#allocation10 + $0x418] sm:$0xff] %v1753_v33 }
 0x135   :  { %1962 = vst [vmem:[#allocation10 + $0x420] sm:$0xff] %v1754_v34  ;;  %v416_v37 = vpop.f32.mrf.mxu1  ;;  %v481_v38 = vpop.f32.mrf.mxu2 }
 0x136   :  { %1963 = vst [vmem:[#allocation10 + $0x428] sm:$0xff] %v1755_v36  ;;  %v1320_v25 = vmul.f32 %v2467_v18, %v416_v37  ;;  %v1321_v39 = vmul.f32 %v2470_v52, %v481_v38  ;;  %v546_v40 = vpop.f32.mrf.mxu3  ;;  %v611_v31 = vpop.f32.mrf.mxu0 }
 0x137   :  { %1964 = vst [vmem:[#allocation10 + $0x430] sm:$0xff] %v1756_v46  ;;  %v1322_v22 = vmul.f32 %v2474_v7, %v546_v40  ;;  %v1323_v16 = vmul.f32 %v2477_v19, %v611_v31 }
 0x138   :  { %v1558_v49 = vadd.f32 %v2480_v20, %v1320_v25  ;;  %v1559_v24 = vadd.f32 %v2483_v21, %v1321_v39  ;;  %675 = vmatmul.f32.gmra.mxu1 %v2635_v1  ;;  %870 = vmatmul.f32.gmra.mxu0 %v2635_v1 }
 0x139   :  { %v1560_v50 = vadd.f32 %v2486_v17, %v1322_v22  ;;  %v1561_v55 = vadd.f32 %v2489_v23, %v1323_v16  ;;  %v2677_v22 = vld [vmem:[#allocation2 + $0x70] sm:$0xff] }
 0x13a   :  { %v1766_v57 = vmax.f32 %v1558_v49, 0.0  ;;  %v1767_v58 = vmax.f32 %v1559_v24, 0.0  ;;  %743 = vmatmul.f32.gmra.mxu2 %v2649_v59 }
 0x13b   :  { %v1768_v60 = vmax.f32 %v1560_v50, 0.0  ;;  %v1769_v61 = vmax.f32 %v1561_v55, 0.0  ;;  %808 = vmatmul.f32.gmra.mxu3 %v2649_v59 }
 0x13c   :  { %1974 = vst [vmem:[#allocation10 + $0x480] sm:$0xff] %v1766_v57 }
 0x13d   :  { %1975 = vst [vmem:[#allocation10 + $0x488] sm:$0xff] %v1767_v58  ;;  %v419_v62 = vpop.f32.mrf.mxu1  ;;  %v484_v63 = vpop.f32.mrf.mxu2 }
 0x13e   :  { %1976 = vst [vmem:[#allocation10 + $0x490] sm:$0xff] %v1768_v60  ;;  %v1333_v51 = vmul.f32 %v2467_v18, %v419_v62  ;;  %v1334_v2 = vmul.f32 %v2470_v52, %v484_v63  ;;  %v549_v44 = vpop.f32.mrf.mxu3  ;;  %v614_v4 = vpop.f32.mrf.mxu0 }
 0x13f   :  { %1977 = vst [vmem:[#allocation10 + $0x498] sm:$0xff] %v1769_v61  ;;  %v1335_v5 = vmul.f32 %v2474_v7, %v549_v44  ;;  %v1336_v8 = vmul.f32 %v2477_v19, %v614_v4 }
 0x140   :  { %v1571_v11 = vadd.f32 %v2480_v20, %v1333_v51  ;;  %v1572_v12 = vadd.f32 %v2483_v21, %v1334_v2  ;;  %678 = vmatmul.f32.gmra.mxu1 %v2649_v59  ;;  %873 = vmatmul.f32.gmra.mxu0 %v2649_v59  ;;  %v2691_v2 = vld [vmem:[#allocation2 + $0x78] sm:$0xff] }
 0x141   :  { %v1573_v13 = vadd.f32 %v2486_v17, %v1335_v5  ;;  %v1574_v14 = vadd.f32 %v2489_v23, %v1336_v8 }
 0x142   :  { %v1779_v30 = vmax.f32 %v1571_v11, 0.0  ;;  %v1780_v26 = vmax.f32 %v1572_v12, 0.0  ;;  %746 = vmatmul.f32.gmra.mxu2 %v2663_v27 }
 0x143   :  { %v1781_v43 = vmax.f32 %v1573_v13, 0.0  ;;  %v1782_v28 = vmax.f32 %v1574_v14, 0.0  ;;  %811 = vmatmul.f32.gmra.mxu3 %v2663_v27 }
 0x144   :  { %1987 = vst [vmem:[#allocation10 + $0x4e8] sm:$0xff] %v1779_v30 }
 0x145   :  { %1988 = vst [vmem:[#allocation10 + $0x4f0] sm:$0xff] %v1780_v26  ;;  %v422_v29 = vpop.f32.mrf.mxu1  ;;  %v487_v32 = vpop.f32.mrf.mxu2 }
 0x146   :  { %1989 = vst [vmem:[#allocation10 + $0x4f8] sm:$0xff] %v1781_v43  ;;  %v1346_v0 = vmul.f32 %v2467_v18, %v422_v29  ;;  %v1347_v45 = vmul.f32 %v2470_v52, %v487_v32  ;;  %v552_v33 = vpop.f32.mrf.mxu3  ;;  %v617_v34 = vpop.f32.mrf.mxu0  ;;  %v2703_v43 = vld [vmem:[#allocation7 + $0x8] sm:$0x1f]  ;;  %v2128_v32 = vld [vmem:[#allocation2] sm:$0xff] }
 0x147   :  { %1990 = vst [vmem:[#allocation10 + $0x500] sm:$0xff] %v1782_v28  ;;  %v1348_v36 = vmul.f32 %v2474_v7, %v552_v33  ;;  %v1349_v46 = vmul.f32 %v2477_v19, %v617_v34 }
 0x148   :  { %v1584_v37 = vadd.f32 %v2480_v20, %v1346_v0  ;;  %v1585_v38 = vadd.f32 %v2483_v21, %v1347_v45  ;;  %681 = vmatmul.f32.gmra.mxu1 %v2663_v27  ;;  %876 = vmatmul.f32.gmra.mxu0 %v2663_v27 }
 0x149   :  { %v1586_v25 = vadd.f32 %v2486_v17, %v1348_v36  ;;  %v1587_v39 = vadd.f32 %v2489_v23, %v1349_v46 }
 0x14a   :  { %v1792_v40 = vmax.f32 %v1584_v37, 0.0  ;;  %v1793_v31 = vmax.f32 %v1585_v38, 0.0  ;;  %749 = vmatmul.f32.gmra.mxu2 %v2677_v22 }
 0x14b   :  { %v1794_v16 = vmax.f32 %v1586_v25, 0.0  ;;  %v1795_v42 = vmax.f32 %v1587_v39, 0.0  ;;  %814 = vmatmul.f32.gmra.mxu3 %v2677_v22 }
 0x14c   :  { %2000 = vst [vmem:[#allocation10 + $0x550] sm:$0xff] %v1792_v40 }
 0x14d   :  { %2001 = vst [vmem:[#allocation10 + $0x558] sm:$0xff] %v1793_v31  ;;  %v425_v48 = vpop.f32.mrf.mxu1  ;;  %v490_v49 = vpop.f32.mrf.mxu2 }
 0x14e   :  { %2002 = vst [vmem:[#allocation10 + $0x560] sm:$0xff] %v1794_v16  ;;  %v1359_v24 = vmul.f32 %v2467_v18, %v425_v48  ;;  %v1360_v53 = vmul.f32 %v2470_v52, %v490_v49  ;;  %v555_v54 = vpop.f32.mrf.mxu3  ;;  %v620_v50 = vpop.f32.mrf.mxu0 }
 0x14f   :  { %2003 = vst [vmem:[#allocation10 + $0x568] sm:$0xff] %v1795_v42  ;;  %v1361_v55 = vmul.f32 %v2474_v7, %v555_v54  ;;  %v1362_v57 = vmul.f32 %v2477_v19, %v620_v50 }
 0x150   :  { %v1597_v58 = vadd.f32 %v2480_v20, %v1359_v24  ;;  %v1598_v60 = vadd.f32 %v2483_v21, %v1360_v53  ;;  %684 = vmatmul.f32.gmra.mxu1 %v2677_v22  ;;  %879 = vmatmul.f32.gmra.mxu0 %v2677_v22 }
 0x151   :  { %v1599_v61 = vadd.f32 %v2486_v17, %v1361_v55  ;;  %v1600_v62 = vadd.f32 %v2489_v23, %v1362_v57  ;;  %v2131_v57 = vld [vmem:[#allocation2 + $0x8] sm:$0xff] }
 0x152   :  { %v1805_v63 = vmax.f32 %v1597_v58, 0.0  ;;  %v1806_v51 = vmax.f32 %v1598_v60, 0.0  ;;  %752 = vmatmul.f32.gmra.mxu2 %v2691_v2 }
 0x153   :  { %v1807_v44 = vmax.f32 %v1599_v61, 0.0  ;;  %v1808_v4 = vmax.f32 %v1600_v62, 0.0  ;;  %817 = vmatmul.f32.gmra.mxu3 %v2691_v2 }
 0x154   :  { %2013 = vst [vmem:[#allocation10 + $0x5b8] sm:$0xff] %v1805_v63 }
 0x155   :  { %2014 = vst [vmem:[#allocation10 + $0x5c0] sm:$0xff] %v1806_v51  ;;  %v428_v5 = vpop.f32.mrf.mxu1  ;;  %v493_v8 = vpop.f32.mrf.mxu2 }
 0x156   :  { %2015 = vst [vmem:[#allocation10 + $0x5c8] sm:$0xff] %v1807_v44  ;;  %v1372_v9 = vmul.f32 %v2467_v18, %v428_v5  ;;  %v1373_v10 = vmul.f32 %v2470_v52, %v493_v8  ;;  %v558_v11 = vpop.f32.mrf.mxu3  ;;  %v623_v12 = vpop.f32.mrf.mxu0 }
 0x157   :  { %2016 = vst [vmem:[#allocation10 + $0x5d0] sm:$0xff] %v1808_v4  ;;  %v1374_v13 = vmul.f32 %v2474_v7, %v558_v11  ;;  %v1375_v14 = vmul.f32 %v2477_v19, %v623_v12  ;;  %v2129_v7 = vld [vmem:[#allocation7] sm:$0xff] }
 0x158   :  { %v1610_v30 = vadd.f32 %v2480_v20, %v1372_v9  ;;  %v1611_v26 = vadd.f32 %v2483_v21, %v1373_v10  ;;  %687 = vmatmul.f32.gmra.mxu1 %v2691_v2  ;;  %882 = vmatmul.f32.gmra.mxu0 %v2691_v2  ;;  %v2707_v19 = vperm.slane %v2129_v7, 5  ;;  %v2709_v20 = vperm.slane %v2129_v7, 6  ;;  %v2711_v21 = vld [vmem:[#allocation8 + $0x8] sm:$0x1f] }
 0x159   :  { %v1612_v18 = vadd.f32 %v2486_v17, %v1374_v13  ;;  %v1613_v52 = vadd.f32 %v2489_v23, %v1375_v14  ;;  %v2713_v33 = vperm.slane %v2129_v7, 7  ;;  %v2716_v17 = vperm.slane %v2703_v43, 0  ;;  %v2130_v23 = vld [vmem:[#allocation8] sm:$0xff] }
 0x15a   :  { %v1818_v28 = vmax.f32 %v1610_v30, 0.0  ;;  %v1819_v29 = vmax.f32 %v1611_v26, 0.0  ;;  %967 = vmatmul.f32.vlgmr.msrb.gmra.mxu2 %v2128_v32  ;;  %v2718_v34 = vperm.slane %v2130_v23, 5  ;;  %v2720_v36 = vperm.slane %v2130_v23, 6  ;;  %v2132_v30 = vld [vmem:[#allocation2 + $0x10] sm:$0xff] }
 0x15b   :  { %v1820_v0 = vmax.f32 %v1612_v18, 0.0  ;;  %v1821_v45 = vmax.f32 %v1613_v52, 0.0  ;;  %1032 = vmatmul.f32.vlgmr.msrb.gmra.mxu3 %v2128_v32  ;;  %v2722_v38 = vperm.slane %v2130_v23, 7  ;;  %v2725_v25 = vperm.slane %v2711_v21, 0 }
 0x15c   :  { %2026 = vst [vmem:[#allocation10 + $0x620] sm:$0xff] %v1818_v28 }
 0x15d   :  { %2027 = vst [vmem:[#allocation10 + $0x628] sm:$0xff] %v1819_v29  ;;  %v643_v46 = vpop.f32.mrf.mxu1  ;;  %v708_v37 = vpop.f32.mrf.mxu2 }
 0x15e   :  { %2028 = vst [vmem:[#allocation10 + $0x630] sm:$0xff] %v1820_v0  ;;  %v1181_v39 = vmul.f32 %v2707_v19, %v643_v46  ;;  %v1182_v40 = vmul.f32 %v2709_v20, %v708_v37  ;;  %v773_v31 = vpop.f32.mrf.mxu3  ;;  %v838_v16 = vpop.f32.mrf.mxu0 }
 0x15f   :  { %2029 = vst [vmem:[#allocation10 + $0x638] sm:$0xff] %v1821_v45  ;;  %v1183_v42 = vmul.f32 %v2713_v33, %v773_v31  ;;  %v1184_v48 = vmul.f32 %v2716_v17, %v838_v16 }
 0x160   :  { %v1419_v49 = vadd.f32 %v2718_v34, %v1181_v39  ;;  %v1420_v24 = vadd.f32 %v2720_v36, %v1182_v40  ;;  %902 = vmatmul.f32.vlgmr.msrb.gmra.mxu1 %v2128_v32  ;;  %1097 = vmatmul.f32.vlgmr.msrb.gmra.mxu0 %v2128_v32 }
 0x161   :  { %v1421_v53 = vadd.f32 %v2722_v38, %v1183_v42  ;;  %v1422_v54 = vadd.f32 %v2725_v25, %v1184_v48  ;;  %v2133_v42 = vld [vmem:[#allocation2 + $0x18] sm:$0xff] }
 0x162   :  { %v1627_v50 = vmax.f32 %v1419_v49, 0.0  ;;  %v1628_v55 = vmax.f32 %v1420_v24, 0.0  ;;  %970 = vmatmul.f32.gmra.mxu2 %v2131_v57 }
 0x163   :  { %v1629_v58 = vmax.f32 %v1421_v53, 0.0  ;;  %v1630_v60 = vmax.f32 %v1422_v54, 0.0  ;;  %1035 = vmatmul.f32.gmra.mxu3 %v2131_v57 }
 0x164   :  { %1835 = vst [vmem:[#allocation10 + $0x28] sm:$0xff] %v1627_v50 }
 0x165   :  { %1836 = vst [vmem:[#allocation10 + $0x30] sm:$0xff] %v1628_v55  ;;  %v646_v61 = vpop.f32.mrf.mxu1  ;;  %v711_v62 = vpop.f32.mrf.mxu2 }
 0x166   :  { %1837 = vst [vmem:[#allocation10 + $0x38] sm:$0xff] %v1629_v58  ;;  %v1194_v63 = vmul.f32 %v2707_v19, %v646_v61  ;;  %v1195_v51 = vmul.f32 %v2709_v20, %v711_v62  ;;  %v776_v44 = vpop.f32.mrf.mxu3  ;;  %v841_v4 = vpop.f32.mrf.mxu0 }
 0x167   :  { %1838 = vst [vmem:[#allocation10 + $0x40] sm:$0xff] %v1630_v60  ;;  %v1196_v5 = vmul.f32 %v2713_v33, %v776_v44  ;;  %v1197_v8 = vmul.f32 %v2716_v17, %v841_v4 }
 0x168   :  { %v1432_v9 = vadd.f32 %v2718_v34, %v1194_v63  ;;  %v1433_v10 = vadd.f32 %v2720_v36, %v1195_v51  ;;  %905 = vmatmul.f32.gmra.mxu1 %v2131_v57  ;;  %1100 = vmatmul.f32.gmra.mxu0 %v2131_v57 }
 0x169   :  { %v1434_v11 = vadd.f32 %v2722_v38, %v1196_v5  ;;  %v1435_v12 = vadd.f32 %v2725_v25, %v1197_v8 }
 0x16a   :  { %v1640_v13 = vmax.f32 %v1432_v9, 0.0  ;;  %v1641_v14 = vmax.f32 %v1433_v10, 0.0  ;;  %973 = vmatmul.f32.gmra.mxu2 %v2132_v30 }
 0x16b   :  { %v1642_v26 = vmax.f32 %v1434_v11, 0.0  ;;  %v1643_v18 = vmax.f32 %v1435_v12, 0.0  ;;  %1038 = vmatmul.f32.gmra.mxu3 %v2132_v30 }
 0x16c   :  { %1848 = vst [vmem:[#allocation10 + $0x90] sm:$0xff] %v1640_v13 }
 0x16d   :  { %1849 = vst [vmem:[#allocation10 + $0x98] sm:$0xff] %v1641_v14  ;;  %v649_v52 = vpop.f32.mrf.mxu1  ;;  %v714_v28 = vpop.f32.mrf.mxu2 }
 0x16e   :  { %1850 = vst [vmem:[#allocation10 + $0xa0] sm:$0xff] %v1642_v26  ;;  %v1207_v29 = vmul.f32 %v2707_v19, %v649_v52  ;;  %v1208_v32 = vmul.f32 %v2709_v20, %v714_v28  ;;  %v779_v7 = vpop.f32.mrf.mxu3  ;;  %v844_v0 = vpop.f32.mrf.mxu0 }
 0x16f   :  { %1851 = vst [vmem:[#allocation10 + $0xa8] sm:$0xff] %v1643_v18  ;;  %v1209_v45 = vmul.f32 %v2713_v33, %v779_v7  ;;  %v1210_v23 = vmul.f32 %v2716_v17, %v844_v0 }
 0x170   :  { %v1445_v46 = vadd.f32 %v2718_v34, %v1207_v29  ;;  %v1446_v37 = vadd.f32 %v2720_v36, %v1208_v32  ;;  %908 = vmatmul.f32.gmra.mxu1 %v2132_v30  ;;  %1103 = vmatmul.f32.gmra.mxu0 %v2132_v30 }
 0x171   :  { %v1447_v39 = vadd.f32 %v2722_v38, %v1209_v45  ;;  %v1448_v40 = vadd.f32 %v2725_v25, %v1210_v23 }
 0x172   :  { %v1653_v31 = vmax.f32 %v1445_v46, 0.0  ;;  %v1654_v16 = vmax.f32 %v1446_v37, 0.0  ;;  %976 = vmatmul.f32.gmra.mxu2 %v2133_v42 }
 0x173   :  { %v1655_v48 = vmax.f32 %v1447_v39, 0.0  ;;  %v1656_v49 = vmax.f32 %v1448_v40, 0.0  ;;  %1041 = vmatmul.f32.gmra.mxu3 %v2133_v42 }
 0x174   :  { %1861 = vst [vmem:[#allocation10 + $0xf8] sm:$0xff] %v1653_v31 }
 0x175   :  { %1862 = vst [vmem:[#allocation10 + $0x100] sm:$0xff] %v1654_v16  ;;  %v652_v24 = vpop.f32.mrf.mxu1  ;;  %v717_v53 = vpop.f32.mrf.mxu2 }
 0x176   :  { %1863 = vst [vmem:[#allocation10 + $0x108] sm:$0xff] %v1655_v48  ;;  %v1220_v54 = vmul.f32 %v2707_v19, %v652_v24  ;;  %v1221_v50 = vmul.f32 %v2709_v20, %v717_v53  ;;  %v782_v55 = vpop.f32.mrf.mxu3  ;;  %v847_v57 = vpop.f32.mrf.mxu0 }
 0x177   :  { %1864 = vst [vmem:[#allocation10 + $0x110] sm:$0xff] %v1656_v49  ;;  %v1222_v58 = vmul.f32 %v2713_v33, %v782_v55  ;;  %v1223_v60 = vmul.f32 %v2716_v17, %v847_v57 }
 0x178   :  { %v1458_v61 = vadd.f32 %v2718_v34, %v1220_v54  ;;  %v1459_v62 = vadd.f32 %v2720_v36, %v1221_v50  ;;  %911 = vmatmul.f32.gmra.mxu1 %v2133_v42  ;;  %1106 = vmatmul.f32.gmra.mxu0 %v2133_v42 }
 0x179   :  { %v1460_v63 = vadd.f32 %v2722_v38, %v1222_v58  ;;  %v1461_v51 = vadd.f32 %v2725_v25, %v1223_v60 }
 0x17a   :  { %v1666_v44 = vmax.f32 %v1458_v61, 0.0  ;;  %v1667_v4 = vmax.f32 %v1459_v62, 0.0  ;;  %979 = vmatmul.f32.gmra.mxu2 %v2537_v47 }
 0x17b   :  { %v1668_v5 = vmax.f32 %v1460_v63, 0.0  ;;  %v1669_v8 = vmax.f32 %v1461_v51, 0.0  ;;  %1044 = vmatmul.f32.gmra.mxu3 %v2537_v47 }
 0x17c   :  { %1874 = vst [vmem:[#allocation10 + $0x160] sm:$0xff] %v1666_v44 }
 0x17d   :  { %1875 = vst [vmem:[#allocation10 + $0x168] sm:$0xff] %v1667_v4  ;;  %v655_v9 = vpop.f32.mrf.mxu1  ;;  %v720_v10 = vpop.f32.mrf.mxu2 }
 0x17e   :  { %1876 = vst [vmem:[#allocation10 + $0x170] sm:$0xff] %v1668_v5  ;;  %v1233_v11 = vmul.f32 %v2707_v19, %v655_v9  ;;  %v1234_v12 = vmul.f32 %v2709_v20, %v720_v10  ;;  %v785_v13 = vpop.f32.mrf.mxu3  ;;  %v850_v14 = vpop.f32.mrf.mxu0 }
 0x17f   :  { %1877 = vst [vmem:[#allocation10 + $0x178] sm:$0xff] %v1669_v8  ;;  %v1235_v30 = vmul.f32 %v2713_v33, %v785_v13  ;;  %v1236_v26 = vmul.f32 %v2716_v17, %v850_v14 }
 0x180   :  { %v1471_v18 = vadd.f32 %v2718_v34, %v1233_v11  ;;  %v1472_v52 = vadd.f32 %v2720_v36, %v1234_v12  ;;  %914 = vmatmul.f32.gmra.mxu1 %v2537_v47  ;;  %1109 = vmatmul.f32.gmra.mxu0 %v2537_v47 }
 0x181   :  { %v1473_v28 = vadd.f32 %v2722_v38, %v1235_v30  ;;  %v1474_v29 = vadd.f32 %v2725_v25, %v1236_v26 }
 0x182   :  { %v1679_v32 = vmax.f32 %v1471_v18, 0.0  ;;  %v1680_v7 = vmax.f32 %v1472_v52, 0.0  ;;  %982 = vmatmul.f32.gmra.mxu2 %v2551_v6 }
 0x183   :  { %v1681_v0 = vmax.f32 %v1473_v28, 0.0  ;;  %v1682_v45 = vmax.f32 %v1474_v29, 0.0  ;;  %1047 = vmatmul.f32.gmra.mxu3 %v2551_v6 }
 0x184   :  { %1887 = vst [vmem:[#allocation10 + $0x1c8] sm:$0xff] %v1679_v32 }
 0x185   :  { %1888 = vst [vmem:[#allocation10 + $0x1d0] sm:$0xff] %v1680_v7  ;;  %v658_v23 = vpop.f32.mrf.mxu1  ;;  %v723_v46 = vpop.f32.mrf.mxu2 }
 0x186   :  { %1889 = vst [vmem:[#allocation10 + $0x1d8] sm:$0xff] %v1681_v0  ;;  %v1246_v37 = vmul.f32 %v2707_v19, %v658_v23  ;;  %v1247_v47 = vmul.f32 %v2709_v20, %v723_v46  ;;  %v788_v39 = vpop.f32.mrf.mxu3  ;;  %v853_v40 = vpop.f32.mrf.mxu0 }
 0x187   :  { %1890 = vst [vmem:[#allocation10 + $0x1e0] sm:$0xff] %v1682_v45  ;;  %v1248_v31 = vmul.f32 %v2713_v33, %v788_v39  ;;  %v1249_v16 = vmul.f32 %v2716_v17, %v853_v40 }
 0x188   :  { %v1484_v42 = vadd.f32 %v2718_v34, %v1246_v37  ;;  %v1485_v48 = vadd.f32 %v2720_v36, %v1247_v47  ;;  %917 = vmatmul.f32.gmra.mxu1 %v2551_v6  ;;  %1112 = vmatmul.f32.gmra.mxu0 %v2551_v6 }
 0x189   :  { %v1486_v49 = vadd.f32 %v2722_v38, %v1248_v31  ;;  %v1487_v24 = vadd.f32 %v2725_v25, %v1249_v16 }
 0x18a   :  { %v1692_v53 = vmax.f32 %v1484_v42, 0.0  ;;  %v1693_v54 = vmax.f32 %v1485_v48, 0.0  ;;  %985 = vmatmul.f32.gmra.mxu2 %v2565_v35 }
 0x18b   :  { %v1694_v50 = vmax.f32 %v1486_v49, 0.0  ;;  %v1695_v55 = vmax.f32 %v1487_v24, 0.0  ;;  %1050 = vmatmul.f32.gmra.mxu3 %v2565_v35 }
 0x18c   :  { %1900 = vst [vmem:[#allocation10 + $0x230] sm:$0xff] %v1692_v53 }
 0x18d   :  { %1901 = vst [vmem:[#allocation10 + $0x238] sm:$0xff] %v1693_v54  ;;  %v661_v57 = vpop.f32.mrf.mxu1  ;;  %v726_v58 = vpop.f32.mrf.mxu2 }
 0x18e   :  { %1902 = vst [vmem:[#allocation10 + $0x240] sm:$0xff] %v1694_v50  ;;  %v1259_v60 = vmul.f32 %v2707_v19, %v661_v57  ;;  %v1260_v6 = vmul.f32 %v2709_v20, %v726_v58  ;;  %v791_v61 = vpop.f32.mrf.mxu3  ;;  %v856_v62 = vpop.f32.mrf.mxu0 }
 0x18f   :  { %1903 = vst [vmem:[#allocation10 + $0x248] sm:$0xff] %v1695_v55  ;;  %v1261_v63 = vmul.f32 %v2713_v33, %v791_v61  ;;  %v1262_v51 = vmul.f32 %v2716_v17, %v856_v62 }
 0x190   :  { %v1497_v44 = vadd.f32 %v2718_v34, %v1259_v60  ;;  %v1498_v4 = vadd.f32 %v2720_v36, %v1260_v6  ;;  %920 = vmatmul.f32.gmra.mxu1 %v2565_v35  ;;  %1115 = vmatmul.f32.gmra.mxu0 %v2565_v35 }
 0x191   :  { %v1499_v5 = vadd.f32 %v2722_v38, %v1261_v63  ;;  %v1500_v8 = vadd.f32 %v2725_v25, %v1262_v51 }
 0x192   :  { %v1705_v9 = vmax.f32 %v1497_v44, 0.0  ;;  %v1706_v10 = vmax.f32 %v1498_v4, 0.0  ;;  %988 = vmatmul.f32.gmra.mxu2 %v2579_v56 }
 0x193   :  { %v1707_v11 = vmax.f32 %v1499_v5, 0.0  ;;  %v1708_v12 = vmax.f32 %v1500_v8, 0.0  ;;  %1053 = vmatmul.f32.gmra.mxu3 %v2579_v56 }
 0x194   :  { %1913 = vst [vmem:[#allocation10 + $0x298] sm:$0xff] %v1705_v9 }
 0x195   :  { %1914 = vst [vmem:[#allocation10 + $0x2a0] sm:$0xff] %v1706_v10  ;;  %v664_v13 = vpop.f32.mrf.mxu1  ;;  %v729_v14 = vpop.f32.mrf.mxu2 }
 0x196   :  { %1915 = vst [vmem:[#allocation10 + $0x2a8] sm:$0xff] %v1707_v11  ;;  %v1272_v30 = vmul.f32 %v2707_v19, %v664_v13  ;;  %v1273_v35 = vmul.f32 %v2709_v20, %v729_v14  ;;  %v794_v26 = vpop.f32.mrf.mxu3  ;;  %v859_v18 = vpop.f32.mrf.mxu0 }
 0x197   :  { %1916 = vst [vmem:[#allocation10 + $0x2b0] sm:$0xff] %v1708_v12  ;;  %v1274_v52 = vmul.f32 %v2713_v33, %v794_v26  ;;  %v1275_v28 = vmul.f32 %v2716_v17, %v859_v18 }
 0x198   :  { %v1510_v29 = vadd.f32 %v2718_v34, %v1272_v30  ;;  %v1511_v32 = vadd.f32 %v2720_v36, %v1273_v35  ;;  %923 = vmatmul.f32.gmra.mxu1 %v2579_v56  ;;  %1118 = vmatmul.f32.gmra.mxu0 %v2579_v56 }
 0x199   :  { %v1512_v7 = vadd.f32 %v2722_v38, %v1274_v52  ;;  %v1513_v0 = vadd.f32 %v2725_v25, %v1275_v28 }
 0x19a   :  { %v1718_v45 = vmax.f32 %v1510_v29, 0.0  ;;  %v1719_v23 = vmax.f32 %v1511_v32, 0.0  ;;  %991 = vmatmul.f32.gmra.mxu2 %v2593_v15 }
 0x19b   :  { %v1720_v46 = vmax.f32 %v1512_v7, 0.0  ;;  %v1721_v37 = vmax.f32 %v1513_v0, 0.0  ;;  %1056 = vmatmul.f32.gmra.mxu3 %v2593_v15 }
 0x19c   :  { %1926 = vst [vmem:[#allocation10 + $0x300] sm:$0xff] %v1718_v45 }
 0x19d   :  { %1927 = vst [vmem:[#allocation10 + $0x308] sm:$0xff] %v1719_v23  ;;  %v667_v47 = vpop.f32.mrf.mxu1  ;;  %v732_v39 = vpop.f32.mrf.mxu2 }
 0x19e   :  { %1928 = vst [vmem:[#allocation10 + $0x310] sm:$0xff] %v1720_v46  ;;  %v1285_v40 = vmul.f32 %v2707_v19, %v667_v47  ;;  %v1286_v56 = vmul.f32 %v2709_v20, %v732_v39  ;;  %v797_v31 = vpop.f32.mrf.mxu3  ;;  %v862_v16 = vpop.f32.mrf.mxu0 }
 0x19f   :  { %1929 = vst [vmem:[#allocation10 + $0x318] sm:$0xff] %v1721_v37  ;;  %v1287_v42 = vmul.f32 %v2713_v33, %v797_v31  ;;  %v1288_v48 = vmul.f32 %v2716_v17, %v862_v16 }
 0x1a0   :  { %v1523_v49 = vadd.f32 %v2718_v34, %v1285_v40  ;;  %v1524_v24 = vadd.f32 %v2720_v36, %v1286_v56  ;;  %926 = vmatmul.f32.gmra.mxu1 %v2593_v15  ;;  %1121 = vmatmul.f32.gmra.mxu0 %v2593_v15 }
 0x1a1   :  { %v1525_v53 = vadd.f32 %v2722_v38, %v1287_v42  ;;  %v1526_v54 = vadd.f32 %v2725_v25, %v1288_v48 }
 0x1a2   :  { %v1731_v50 = vmax.f32 %v1523_v49, 0.0  ;;  %v1732_v55 = vmax.f32 %v1524_v24, 0.0  ;;  %994 = vmatmul.f32.gmra.mxu2 %v2607_v41 }
 0x1a3   :  { %v1733_v57 = vmax.f32 %v1525_v53, 0.0  ;;  %v1734_v58 = vmax.f32 %v1526_v54, 0.0  ;;  %1059 = vmatmul.f32.gmra.mxu3 %v2607_v41 }
 0x1a4   :  { %1939 = vst [vmem:[#allocation10 + $0x368] sm:$0xff] %v1731_v50 }
 0x1a5   :  { %1940 = vst [vmem:[#allocation10 + $0x370] sm:$0xff] %v1732_v55  ;;  %v670_v60 = vpop.f32.mrf.mxu1  ;;  %v735_v6 = vpop.f32.mrf.mxu2 }
 0x1a6   :  { %1941 = vst [vmem:[#allocation10 + $0x378] sm:$0xff] %v1733_v57  ;;  %v1298_v61 = vmul.f32 %v2707_v19, %v670_v60  ;;  %v1299_v15 = vmul.f32 %v2709_v20, %v735_v6  ;;  %v800_v62 = vpop.f32.mrf.mxu3  ;;  %v865_v63 = vpop.f32.mrf.mxu0 }
 0x1a7   :  { %1942 = vst [vmem:[#allocation10 + $0x380] sm:$0xff] %v1734_v58  ;;  %v1300_v51 = vmul.f32 %v2713_v33, %v800_v62  ;;  %v1301_v44 = vmul.f32 %v2716_v17, %v865_v63 }
 0x1a8   :  { %v1536_v4 = vadd.f32 %v2718_v34, %v1298_v61  ;;  %v1537_v5 = vadd.f32 %v2720_v36, %v1299_v15  ;;  %929 = vmatmul.f32.gmra.mxu1 %v2607_v41  ;;  %1124 = vmatmul.f32.gmra.mxu0 %v2607_v41 }
 0x1a9   :  { %v1538_v8 = vadd.f32 %v2722_v38, %v1300_v51  ;;  %v1539_v9 = vadd.f32 %v2725_v25, %v1301_v44 }
 0x1aa   :  { %v1744_v10 = vmax.f32 %v1536_v4, 0.0  ;;  %v1745_v11 = vmax.f32 %v1537_v5, 0.0  ;;  %997 = vmatmul.f32.gmra.mxu2 %v2621_v3 }
 0x1ab   :  { %v1746_v12 = vmax.f32 %v1538_v8, 0.0  ;;  %v1747_v13 = vmax.f32 %v1539_v9, 0.0  ;;  %1062 = vmatmul.f32.gmra.mxu3 %v2621_v3 }
 0x1ac   :  { %1952 = vst [vmem:[#allocation10 + $0x3d0] sm:$0xff] %v1744_v10 }
 0x1ad   :  { %1953 = vst [vmem:[#allocation10 + $0x3d8] sm:$0xff] %v1745_v11  ;;  %v673_v14 = vpop.f32.mrf.mxu1  ;;  %v738_v30 = vpop.f32.mrf.mxu2 }
 0x1ae   :  { %1954 = vst [vmem:[#allocation10 + $0x3e0] sm:$0xff] %v1746_v12  ;;  %v1311_v35 = vmul.f32 %v2707_v19, %v673_v14  ;;  %v1312_v41 = vmul.f32 %v2709_v20, %v738_v30  ;;  %v803_v26 = vpop.f32.mrf.mxu3  ;;  %v868_v18 = vpop.f32.mrf.mxu0 }
 0x1af   :  { %1955 = vst [vmem:[#allocation10 + $0x3e8] sm:$0xff] %v1747_v13  ;;  %v1313_v52 = vmul.f32 %v2713_v33, %v803_v26  ;;  %v1314_v28 = vmul.f32 %v2716_v17, %v868_v18 }
 0x1b0   :  { %v1549_v29 = vadd.f32 %v2718_v34, %v1311_v35  ;;  %v1550_v32 = vadd.f32 %v2720_v36, %v1312_v41  ;;  %932 = vmatmul.f32.gmra.mxu1 %v2621_v3  ;;  %1127 = vmatmul.f32.gmra.mxu0 %v2621_v3 }
 0x1b1   :  { %v1551_v7 = vadd.f32 %v2722_v38, %v1313_v52  ;;  %v1552_v0 = vadd.f32 %v2725_v25, %v1314_v28 }
 0x1b2   :  { %v1757_v45 = vmax.f32 %v1549_v29, 0.0  ;;  %v1758_v23 = vmax.f32 %v1550_v32, 0.0  ;;  %1000 = vmatmul.f32.gmra.mxu2 %v2635_v1 }
 0x1b3   :  { %v1759_v46 = vmax.f32 %v1551_v7, 0.0  ;;  %v1760_v37 = vmax.f32 %v1552_v0, 0.0  ;;  %1065 = vmatmul.f32.gmra.mxu3 %v2635_v1 }
 0x1b4   :  { %1965 = vst [vmem:[#allocation10 + $0x438] sm:$0xff] %v1757_v45 }
 0x1b5   :  { %1966 = vst [vmem:[#allocation10 + $0x440] sm:$0xff] %v1758_v23  ;;  %v676_v47 = vpop.f32.mrf.mxu1  ;;  %v741_v39 = vpop.f32.mrf.mxu2 }
 0x1b6   :  { %1967 = vst [vmem:[#allocation10 + $0x448] sm:$0xff] %v1759_v46  ;;  %v1324_v40 = vmul.f32 %v2707_v19, %v676_v47  ;;  %v1325_v3 = vmul.f32 %v2709_v20, %v741_v39  ;;  %v806_v56 = vpop.f32.mrf.mxu3  ;;  %v871_v31 = vpop.f32.mrf.mxu0 }
 0x1b7   :  { %1968 = vst [vmem:[#allocation10 + $0x450] sm:$0xff] %v1760_v37  ;;  %v1326_v16 = vmul.f32 %v2713_v33, %v806_v56  ;;  %v1327_v42 = vmul.f32 %v2716_v17, %v871_v31 }
 0x1b8   :  { %v1562_v48 = vadd.f32 %v2718_v34, %v1324_v40  ;;  %v1563_v49 = vadd.f32 %v2720_v36, %v1325_v3  ;;  %935 = vmatmul.f32.gmra.mxu1 %v2635_v1  ;;  %1130 = vmatmul.f32.gmra.mxu0 %v2635_v1 }
 0x1b9   :  { %v1564_v24 = vadd.f32 %v2722_v38, %v1326_v16  ;;  %v1565_v53 = vadd.f32 %v2725_v25, %v1327_v42 }
 0x1ba   :  { %v1770_v54 = vmax.f32 %v1562_v48, 0.0  ;;  %v1771_v50 = vmax.f32 %v1563_v49, 0.0  ;;  %1003 = vmatmul.f32.gmra.mxu2 %v2649_v59 }
 0x1bb   :  { %v1772_v55 = vmax.f32 %v1564_v24, 0.0  ;;  %v1773_v57 = vmax.f32 %v1565_v53, 0.0  ;;  %1068 = vmatmul.f32.gmra.mxu3 %v2649_v59 }
 0x1bc   :  { %1978 = vst [vmem:[#allocation10 + $0x4a0] sm:$0xff] %v1770_v54 }
 0x1bd   :  { %1979 = vst [vmem:[#allocation10 + $0x4a8] sm:$0xff] %v1771_v50  ;;  %v679_v58 = vpop.f32.mrf.mxu1  ;;  %v744_v60 = vpop.f32.mrf.mxu2 }
 0x1be   :  { %1980 = vst [vmem:[#allocation10 + $0x4b0] sm:$0xff] %v1772_v55  ;;  %v1337_v6 = vmul.f32 %v2707_v19, %v679_v58  ;;  %v1338_v1 = vmul.f32 %v2709_v20, %v744_v60  ;;  %v809_v61 = vpop.f32.mrf.mxu3  ;;  %v874_v15 = vpop.f32.mrf.mxu0 }
 0x1bf   :  { %1981 = vst [vmem:[#allocation10 + $0x4b8] sm:$0xff] %v1773_v57  ;;  %v1339_v62 = vmul.f32 %v2713_v33, %v809_v61  ;;  %v1340_v63 = vmul.f32 %v2716_v17, %v874_v15 }
 0x1c0   :  { %v1575_v51 = vadd.f32 %v2718_v34, %v1337_v6  ;;  %v1576_v44 = vadd.f32 %v2720_v36, %v1338_v1  ;;  %938 = vmatmul.f32.gmra.mxu1 %v2649_v59  ;;  %1133 = vmatmul.f32.gmra.mxu0 %v2649_v59 }
 0x1c1   :  { %v1577_v4 = vadd.f32 %v2722_v38, %v1339_v62  ;;  %v1578_v5 = vadd.f32 %v2725_v25, %v1340_v63  ;;  %v2904_v63 = vperm.slane %v2703_v43, 1 }
 0x1c2   :  { %v1783_v8 = vmax.f32 %v1575_v51, 0.0  ;;  %v1784_v9 = vmax.f32 %v1576_v44, 0.0  ;;  %1006 = vmatmul.f32.gmra.mxu2 %v2663_v27  ;;  %v2913_v51 = vperm.slane %v2703_v43, 4 }
 0x1c3   :  { %v1785_v10 = vmax.f32 %v1577_v4, 0.0  ;;  %v1786_v11 = vmax.f32 %v1578_v5, 0.0  ;;  %1071 = vmatmul.f32.gmra.mxu3 %v2663_v27  ;;  %v2922_v4 = vperm.slane %v2711_v21, 3  ;;  %v2925_v5 = vperm.slane %v2711_v21, 4 }
 0x1c4   :  { %1991 = vst [vmem:[#allocation10 + $0x508] sm:$0xff] %v1783_v8 }
 0x1c5   :  { %1992 = vst [vmem:[#allocation10 + $0x510] sm:$0xff] %v1784_v9  ;;  %v682_v12 = vpop.f32.mrf.mxu1  ;;  %v747_v13 = vpop.f32.mrf.mxu2 }
 0x1c6   :  { %1993 = vst [vmem:[#allocation10 + $0x518] sm:$0xff] %v1785_v10  ;;  %v1350_v14 = vmul.f32 %v2707_v19, %v682_v12  ;;  %v1351_v59 = vmul.f32 %v2709_v20, %v747_v13  ;;  %v812_v30 = vpop.f32.mrf.mxu3  ;;  %v877_v35 = vpop.f32.mrf.mxu0 }
 0x1c7   :  { %1994 = vst [vmem:[#allocation10 + $0x520] sm:$0xff] %v1786_v11  ;;  %v1352_v41 = vmul.f32 %v2713_v33, %v812_v30  ;;  %v1353_v26 = vmul.f32 %v2716_v17, %v877_v35 }
 0x1c8   :  { %v1588_v18 = vadd.f32 %v2718_v34, %v1350_v14  ;;  %v1589_v52 = vadd.f32 %v2720_v36, %v1351_v59  ;;  %941 = vmatmul.f32.gmra.mxu1 %v2663_v27  ;;  %1136 = vmatmul.f32.gmra.mxu0 %v2663_v27 }
 0x1c9   :  { %v1590_v28 = vadd.f32 %v2722_v38, %v1352_v41  ;;  %v1591_v29 = vadd.f32 %v2725_v25, %v1353_v26 }
 0x1ca   :  { %v1796_v32 = vmax.f32 %v1588_v18, 0.0  ;;  %v1797_v7 = vmax.f32 %v1589_v52, 0.0  ;;  %1009 = vmatmul.f32.gmra.mxu2 %v2677_v22 }
 0x1cb   :  { %v1798_v0 = vmax.f32 %v1590_v28, 0.0  ;;  %v1799_v45 = vmax.f32 %v1591_v29, 0.0  ;;  %1074 = vmatmul.f32.gmra.mxu3 %v2677_v22 }
 0x1cc   :  { %2004 = vst [vmem:[#allocation10 + $0x570] sm:$0xff] %v1796_v32 }
 0x1cd   :  { %2005 = vst [vmem:[#allocation10 + $0x578] sm:$0xff] %v1797_v7  ;;  %v685_v23 = vpop.f32.mrf.mxu1  ;;  %v750_v46 = vpop.f32.mrf.mxu2 }
 0x1ce   :  { %2006 = vst [vmem:[#allocation10 + $0x580] sm:$0xff] %v1798_v0  ;;  %v1363_v37 = vmul.f32 %v2707_v19, %v685_v23  ;;  %v1364_v27 = vmul.f32 %v2709_v20, %v750_v46  ;;  %v815_v47 = vpop.f32.mrf.mxu3  ;;  %v880_v39 = vpop.f32.mrf.mxu0 }
 0x1cf   :  { %2007 = vst [vmem:[#allocation10 + $0x588] sm:$0xff] %v1799_v45  ;;  %v1365_v40 = vmul.f32 %v2713_v33, %v815_v47  ;;  %v1366_v3 = vmul.f32 %v2716_v17, %v880_v39 }
 0x1d0   :  { %v1601_v56 = vadd.f32 %v2718_v34, %v1363_v37  ;;  %v1602_v31 = vadd.f32 %v2720_v36, %v1364_v27  ;;  %944 = vmatmul.f32.gmra.mxu1 %v2677_v22  ;;  %1139 = vmatmul.f32.gmra.mxu0 %v2677_v22 }
 0x1d1   :  { %v1603_v16 = vadd.f32 %v2722_v38, %v1365_v40  ;;  %v1604_v42 = vadd.f32 %v2725_v25, %v1366_v3 }
 0x1d2   :  { %v1809_v48 = vmax.f32 %v1601_v56, 0.0  ;;  %v1810_v49 = vmax.f32 %v1602_v31, 0.0  ;;  %1012 = vmatmul.f32.gmra.mxu2 %v2691_v2 }
 0x1d3   :  { %v1811_v24 = vmax.f32 %v1603_v16, 0.0  ;;  %v1812_v53 = vmax.f32 %v1604_v42, 0.0  ;;  %1077 = vmatmul.f32.gmra.mxu3 %v2691_v2 }
 0x1d4   :  { %2017 = vst [vmem:[#allocation10 + $0x5d8] sm:$0xff] %v1809_v48 }
 0x1d5   :  { %2018 = vst [vmem:[#allocation10 + $0x5e0] sm:$0xff] %v1810_v49  ;;  %v688_v54 = vpop.f32.mrf.mxu1  ;;  %v753_v50 = vpop.f32.mrf.mxu2 }
 0x1d6   :  { %2019 = vst [vmem:[#allocation10 + $0x5e8] sm:$0xff] %v1811_v24  ;;  %v1376_v55 = vmul.f32 %v2707_v19, %v688_v54  ;;  %v1377_v22 = vmul.f32 %v2709_v20, %v753_v50  ;;  %v818_v57 = vpop.f32.mrf.mxu3  ;;  %v883_v58 = vpop.f32.mrf.mxu0 }
 0x1d7   :  { %2020 = vst [vmem:[#allocation10 + $0x5f0] sm:$0xff] %v1812_v53  ;;  %v1378_v60 = vmul.f32 %v2713_v33, %v818_v57  ;;  %v1379_v6 = vmul.f32 %v2716_v17, %v883_v58  ;;  %v2907_v33 = vperm.slane %v2703_v43, 2 }
 0x1d8   :  { %v1614_v1 = vadd.f32 %v2718_v34, %v1376_v55  ;;  %v1615_v61 = vadd.f32 %v2720_v36, %v1377_v22  ;;  %947 = vmatmul.f32.gmra.mxu1 %v2691_v2  ;;  %1142 = vmatmul.f32.gmra.mxu0 %v2691_v2  ;;  %v2910_v36 = vperm.slane %v2703_v43, 3  ;;  %v2916_v2 = vperm.slane %v2711_v21, 1 }
 0x1d9   :  { %v1616_v15 = vadd.f32 %v2722_v38, %v1378_v60  ;;  %v1617_v19 = vadd.f32 %v2725_v25, %v1379_v6  ;;  %v2919_v38 = vperm.slane %v2711_v21, 2 }
 0x1da   :  { %v1822_v20 = vmax.f32 %v1614_v1, 0.0  ;;  %v1823_v62 = vmax.f32 %v1615_v61, 0.0 }
 0x1db   :  { %v1824_v17 = vmax.f32 %v1616_v15, 0.0  ;;  %v1825_v34 = vmax.f32 %v1617_v19, 0.0 }
 0x1dc   :  { %2030 = vst [vmem:[#allocation10 + $0x640] sm:$0xff] %v1822_v20 }
 0x1dd   :  { %2031 = vst [vmem:[#allocation10 + $0x648] sm:$0xff] %v1823_v62  ;;  %v903_v25 = vpop.f32.mrf.mxu1  ;;  %v968_v44 = vpop.f32.mrf.mxu2 }
 0x1de   :  { %2032 = vst [vmem:[#allocation10 + $0x650] sm:$0xff] %v1824_v17  ;;  %v1185_v43 = vmul.f32 %v2904_v63, %v903_v25  ;;  %v1186_v8 = vmul.f32 %v2907_v33, %v968_v44  ;;  %v1033_v9 = vpop.f32.mrf.mxu3  ;;  %v1098_v10 = vpop.f32.mrf.mxu0 }
 0x1df   :  { %2033 = vst [vmem:[#allocation10 + $0x658] sm:$0xff] %v1825_v34  ;;  %v1187_v11 = vmul.f32 %v2910_v36, %v1033_v9  ;;  %v1188_v12 = vmul.f32 %v2913_v51, %v1098_v10 }
 0x1e0   :  { %v1423_v13 = vadd.f32 %v2916_v2, %v1185_v43  ;;  %v1424_v14 = vadd.f32 %v2919_v38, %v1186_v8 }
 0x1e1   :  { %v1425_v59 = vadd.f32 %v2922_v4, %v1187_v11  ;;  %v1426_v21 = vadd.f32 %v2925_v5, %v1188_v12 }
 0x1e2   :  { %v1631_v30 = vmax.f32 %v1423_v13, 0.0  ;;  %v1632_v35 = vmax.f32 %v1424_v14, 0.0 }
 0x1e3   :  { %v1633_v41 = vmax.f32 %v1425_v59, 0.0  ;;  %v1634_v26 = vmax.f32 %v1426_v21, 0.0 }
 0x1e4   :  { %1839 = vst [vmem:[#allocation10 + $0x48] sm:$0xff] %v1631_v30 }
 0x1e5   :  { %1840 = vst [vmem:[#allocation10 + $0x50] sm:$0xff] %v1632_v35  ;;  %v906_v18 = vpop.f32.mrf.mxu1  ;;  %v971_v52 = vpop.f32.mrf.mxu2 }
 0x1e6   :  { %1841 = vst [vmem:[#allocation10 + $0x58] sm:$0xff] %v1633_v41  ;;  %v1198_v28 = vmul.f32 %v2904_v63, %v906_v18  ;;  %v1199_v29 = vmul.f32 %v2907_v33, %v971_v52  ;;  %v1036_v32 = vpop.f32.mrf.mxu3  ;;  %v1101_v7 = vpop.f32.mrf.mxu0 }
 0x1e7   :  { %1842 = vst [vmem:[#allocation10 + $0x60] sm:$0xff] %v1634_v26  ;;  %v1200_v0 = vmul.f32 %v2910_v36, %v1036_v32  ;;  %v1201_v45 = vmul.f32 %v2913_v51, %v1101_v7 }
 0x1e8   :  { %v1436_v23 = vadd.f32 %v2916_v2, %v1198_v28  ;;  %v1437_v46 = vadd.f32 %v2919_v38, %v1199_v29 }
 0x1e9   :  { %v1438_v37 = vadd.f32 %v2922_v4, %v1200_v0  ;;  %v1439_v27 = vadd.f32 %v2925_v5, %v1201_v45 }
 0x1ea   :  { %v1644_v47 = vmax.f32 %v1436_v23, 0.0  ;;  %v1645_v39 = vmax.f32 %v1437_v46, 0.0 }
 0x1eb   :  { %v1646_v40 = vmax.f32 %v1438_v37, 0.0  ;;  %v1647_v3 = vmax.f32 %v1439_v27, 0.0 }
 0x1ec   :  { %1852 = vst [vmem:[#allocation10 + $0xb0] sm:$0xff] %v1644_v47 }
 0x1ed   :  { %1853 = vst [vmem:[#allocation10 + $0xb8] sm:$0xff] %v1645_v39  ;;  %v909_v56 = vpop.f32.mrf.mxu1  ;;  %v974_v31 = vpop.f32.mrf.mxu2 }
 0x1ee   :  { %1854 = vst [vmem:[#allocation10 + $0xc0] sm:$0xff] %v1646_v40  ;;  %v1211_v16 = vmul.f32 %v2904_v63, %v909_v56  ;;  %v1212_v42 = vmul.f32 %v2907_v33, %v974_v31  ;;  %v1039_v48 = vpop.f32.mrf.mxu3  ;;  %v1104_v49 = vpop.f32.mrf.mxu0 }
 0x1ef   :  { %1855 = vst [vmem:[#allocation10 + $0xc8] sm:$0xff] %v1647_v3  ;;  %v1213_v24 = vmul.f32 %v2910_v36, %v1039_v48  ;;  %v1214_v53 = vmul.f32 %v2913_v51, %v1104_v49 }
 0x1f0   :  { %v1449_v54 = vadd.f32 %v2916_v2, %v1211_v16  ;;  %v1450_v50 = vadd.f32 %v2919_v38, %v1212_v42 }
 0x1f1   :  { %v1451_v55 = vadd.f32 %v2922_v4, %v1213_v24  ;;  %v1452_v22 = vadd.f32 %v2925_v5, %v1214_v53 }
 0x1f2   :  { %v1657_v57 = vmax.f32 %v1449_v54, 0.0  ;;  %v1658_v58 = vmax.f32 %v1450_v50, 0.0 }
 0x1f3   :  { %v1659_v60 = vmax.f32 %v1451_v55, 0.0  ;;  %v1660_v6 = vmax.f32 %v1452_v22, 0.0 }
 0x1f4   :  { %1865 = vst [vmem:[#allocation10 + $0x118] sm:$0xff] %v1657_v57 }
 0x1f5   :  { %1866 = vst [vmem:[#allocation10 + $0x120] sm:$0xff] %v1658_v58  ;;  %v912_v1 = vpop.f32.mrf.mxu1  ;;  %v977_v61 = vpop.f32.mrf.mxu2 }
 0x1f6   :  { %1867 = vst [vmem:[#allocation10 + $0x128] sm:$0xff] %v1659_v60  ;;  %v1224_v15 = vmul.f32 %v2904_v63, %v912_v1  ;;  %v1225_v19 = vmul.f32 %v2907_v33, %v977_v61  ;;  %v1042_v20 = vpop.f32.mrf.mxu3  ;;  %v1107_v62 = vpop.f32.mrf.mxu0 }
 0x1f7   :  { %1868 = vst [vmem:[#allocation10 + $0x130] sm:$0xff] %v1660_v6  ;;  %v1226_v17 = vmul.f32 %v2910_v36, %v1042_v20  ;;  %v1227_v34 = vmul.f32 %v2913_v51, %v1107_v62 }
 0x1f8   :  { %v1462_v25 = vadd.f32 %v2916_v2, %v1224_v15  ;;  %v1463_v44 = vadd.f32 %v2919_v38, %v1225_v19 }
 0x1f9   :  { %v1464_v43 = vadd.f32 %v2922_v4, %v1226_v17  ;;  %v1465_v8 = vadd.f32 %v2925_v5, %v1227_v34 }
 0x1fa   :  { %v1670_v9 = vmax.f32 %v1462_v25, 0.0  ;;  %v1671_v10 = vmax.f32 %v1463_v44, 0.0 }
 0x1fb   :  { %v1672_v11 = vmax.f32 %v1464_v43, 0.0  ;;  %v1673_v12 = vmax.f32 %v1465_v8, 0.0 }
 0x1fc   :  { %1878 = vst [vmem:[#allocation10 + $0x180] sm:$0xff] %v1670_v9 }
 0x1fd   :  { %1879 = vst [vmem:[#allocation10 + $0x188] sm:$0xff] %v1671_v10  ;;  %v915_v13 = vpop.f32.mrf.mxu1  ;;  %v980_v14 = vpop.f32.mrf.mxu2 }
 0x1fe   :  { %1880 = vst [vmem:[#allocation10 + $0x190] sm:$0xff] %v1672_v11  ;;  %v1237_v59 = vmul.f32 %v2904_v63, %v915_v13  ;;  %v1238_v21 = vmul.f32 %v2907_v33, %v980_v14  ;;  %v1045_v30 = vpop.f32.mrf.mxu3  ;;  %v1110_v35 = vpop.f32.mrf.mxu0 }
 0x1ff   :  { %1881 = vst [vmem:[#allocation10 + $0x198] sm:$0xff] %v1673_v12  ;;  %v1239_v41 = vmul.f32 %v2910_v36, %v1045_v30  ;;  %v1240_v26 = vmul.f32 %v2913_v51, %v1110_v35 }
 0x200   :  { %v1475_v18 = vadd.f32 %v2916_v2, %v1237_v59  ;;  %v1476_v52 = vadd.f32 %v2919_v38, %v1238_v21 }
 0x201   :  { %v1477_v28 = vadd.f32 %v2922_v4, %v1239_v41  ;;  %v1478_v29 = vadd.f32 %v2925_v5, %v1240_v26 }
 0x202   :  { %v1683_v32 = vmax.f32 %v1475_v18, 0.0  ;;  %v1684_v7 = vmax.f32 %v1476_v52, 0.0 }
 0x203   :  { %v1685_v0 = vmax.f32 %v1477_v28, 0.0  ;;  %v1686_v45 = vmax.f32 %v1478_v29, 0.0 }
 0x204   :  { %1891 = vst [vmem:[#allocation10 + $0x1e8] sm:$0xff] %v1683_v32 }
 0x205   :  { %1892 = vst [vmem:[#allocation10 + $0x1f0] sm:$0xff] %v1684_v7  ;;  %v918_v23 = vpop.f32.mrf.mxu1  ;;  %v983_v46 = vpop.f32.mrf.mxu2 }
 0x206   :  { %1893 = vst [vmem:[#allocation10 + $0x1f8] sm:$0xff] %v1685_v0  ;;  %v1250_v37 = vmul.f32 %v2904_v63, %v918_v23  ;;  %v1251_v27 = vmul.f32 %v2907_v33, %v983_v46  ;;  %v1048_v47 = vpop.f32.mrf.mxu3  ;;  %v1113_v39 = vpop.f32.mrf.mxu0 }
 0x207   :  { %1894 = vst [vmem:[#allocation10 + $0x200] sm:$0xff] %v1686_v45  ;;  %v1252_v40 = vmul.f32 %v2910_v36, %v1048_v47  ;;  %v1253_v3 = vmul.f32 %v2913_v51, %v1113_v39 }
 0x208   :  { %v1488_v56 = vadd.f32 %v2916_v2, %v1250_v37  ;;  %v1489_v31 = vadd.f32 %v2919_v38, %v1251_v27 }
 0x209   :  { %v1490_v16 = vadd.f32 %v2922_v4, %v1252_v40  ;;  %v1491_v42 = vadd.f32 %v2925_v5, %v1253_v3 }
 0x20a   :  { %v1696_v48 = vmax.f32 %v1488_v56, 0.0  ;;  %v1697_v49 = vmax.f32 %v1489_v31, 0.0 }
 0x20b   :  { %v1698_v24 = vmax.f32 %v1490_v16, 0.0  ;;  %v1699_v53 = vmax.f32 %v1491_v42, 0.0 }
 0x20c   :  { %1904 = vst [vmem:[#allocation10 + $0x250] sm:$0xff] %v1696_v48 }
 0x20d   :  { %1905 = vst [vmem:[#allocation10 + $0x258] sm:$0xff] %v1697_v49  ;;  %v921_v54 = vpop.f32.mrf.mxu1  ;;  %v986_v50 = vpop.f32.mrf.mxu2 }
 0x20e   :  { %1906 = vst [vmem:[#allocation10 + $0x260] sm:$0xff] %v1698_v24  ;;  %v1263_v55 = vmul.f32 %v2904_v63, %v921_v54  ;;  %v1264_v22 = vmul.f32 %v2907_v33, %v986_v50  ;;  %v1051_v57 = vpop.f32.mrf.mxu3  ;;  %v1116_v58 = vpop.f32.mrf.mxu0 }
 0x20f   :  { %1907 = vst [vmem:[#allocation10 + $0x268] sm:$0xff] %v1699_v53  ;;  %v1265_v60 = vmul.f32 %v2910_v36, %v1051_v57  ;;  %v1266_v6 = vmul.f32 %v2913_v51, %v1116_v58 }
 0x210   :  { %v1501_v1 = vadd.f32 %v2916_v2, %v1263_v55  ;;  %v1502_v61 = vadd.f32 %v2919_v38, %v1264_v22 }
 0x211   :  { %v1503_v15 = vadd.f32 %v2922_v4, %v1265_v60  ;;  %v1504_v19 = vadd.f32 %v2925_v5, %v1266_v6 }
 0x212   :  { %v1709_v20 = vmax.f32 %v1501_v1, 0.0  ;;  %v1710_v62 = vmax.f32 %v1502_v61, 0.0 }
 0x213   :  { %v1711_v17 = vmax.f32 %v1503_v15, 0.0  ;;  %v1712_v34 = vmax.f32 %v1504_v19, 0.0 }
 0x214   :  { %1917 = vst [vmem:[#allocation10 + $0x2b8] sm:$0xff] %v1709_v20 }
 0x215   :  { %1918 = vst [vmem:[#allocation10 + $0x2c0] sm:$0xff] %v1710_v62  ;;  %v924_v25 = vpop.f32.mrf.mxu1  ;;  %v989_v44 = vpop.f32.mrf.mxu2 }
 0x216   :  { %1919 = vst [vmem:[#allocation10 + $0x2c8] sm:$0xff] %v1711_v17  ;;  %v1276_v43 = vmul.f32 %v2904_v63, %v924_v25  ;;  %v1277_v8 = vmul.f32 %v2907_v33, %v989_v44  ;;  %v1054_v9 = vpop.f32.mrf.mxu3  ;;  %v1119_v10 = vpop.f32.mrf.mxu0 }
 0x217   :  { %1920 = vst [vmem:[#allocation10 + $0x2d0] sm:$0xff] %v1712_v34  ;;  %v1278_v11 = vmul.f32 %v2910_v36, %v1054_v9  ;;  %v1279_v12 = vmul.f32 %v2913_v51, %v1119_v10 }
 0x218   :  { %v1514_v13 = vadd.f32 %v2916_v2, %v1276_v43  ;;  %v1515_v14 = vadd.f32 %v2919_v38, %v1277_v8 }
 0x219   :  { %v1516_v59 = vadd.f32 %v2922_v4, %v1278_v11  ;;  %v1517_v21 = vadd.f32 %v2925_v5, %v1279_v12 }
 0x21a   :  { %v1722_v30 = vmax.f32 %v1514_v13, 0.0  ;;  %v1723_v35 = vmax.f32 %v1515_v14, 0.0 }
 0x21b   :  { %v1724_v41 = vmax.f32 %v1516_v59, 0.0  ;;  %v1725_v26 = vmax.f32 %v1517_v21, 0.0 }
 0x21c   :  { %1930 = vst [vmem:[#allocation10 + $0x320] sm:$0xff] %v1722_v30 }
 0x21d   :  { %1931 = vst [vmem:[#allocation10 + $0x328] sm:$0xff] %v1723_v35  ;;  %v927_v18 = vpop.f32.mrf.mxu1  ;;  %v992_v52 = vpop.f32.mrf.mxu2 }
 0x21e   :  { %1932 = vst [vmem:[#allocation10 + $0x330] sm:$0xff] %v1724_v41  ;;  %v1289_v28 = vmul.f32 %v2904_v63, %v927_v18  ;;  %v1290_v29 = vmul.f32 %v2907_v33, %v992_v52  ;;  %v1057_v32 = vpop.f32.mrf.mxu3  ;;  %v1122_v7 = vpop.f32.mrf.mxu0 }
 0x21f   :  { %1933 = vst [vmem:[#allocation10 + $0x338] sm:$0xff] %v1725_v26  ;;  %v1291_v0 = vmul.f32 %v2910_v36, %v1057_v32  ;;  %v1292_v45 = vmul.f32 %v2913_v51, %v1122_v7 }
 0x220   :  { %v1527_v23 = vadd.f32 %v2916_v2, %v1289_v28  ;;  %v1528_v46 = vadd.f32 %v2919_v38, %v1290_v29 }
 0x221   :  { %v1529_v37 = vadd.f32 %v2922_v4, %v1291_v0  ;;  %v1530_v27 = vadd.f32 %v2925_v5, %v1292_v45 }
 0x222   :  { %v1735_v47 = vmax.f32 %v1527_v23, 0.0  ;;  %v1736_v39 = vmax.f32 %v1528_v46, 0.0 }
 0x223   :  { %v1737_v40 = vmax.f32 %v1529_v37, 0.0  ;;  %v1738_v3 = vmax.f32 %v1530_v27, 0.0 }
 0x224   :  { %1943 = vst [vmem:[#allocation10 + $0x388] sm:$0xff] %v1735_v47 }
 0x225   :  { %1944 = vst [vmem:[#allocation10 + $0x390] sm:$0xff] %v1736_v39  ;;  %v930_v56 = vpop.f32.mrf.mxu1  ;;  %v995_v31 = vpop.f32.mrf.mxu2 }
 0x226   :  { %1945 = vst [vmem:[#allocation10 + $0x398] sm:$0xff] %v1737_v40  ;;  %v1302_v16 = vmul.f32 %v2904_v63, %v930_v56  ;;  %v1303_v42 = vmul.f32 %v2907_v33, %v995_v31  ;;  %v1060_v48 = vpop.f32.mrf.mxu3  ;;  %v1125_v49 = vpop.f32.mrf.mxu0 }
 0x227   :  { %1946 = vst [vmem:[#allocation10 + $0x3a0] sm:$0xff] %v1738_v3  ;;  %v1304_v24 = vmul.f32 %v2910_v36, %v1060_v48  ;;  %v1305_v53 = vmul.f32 %v2913_v51, %v1125_v49 }
 0x228   :  { %v1540_v54 = vadd.f32 %v2916_v2, %v1302_v16  ;;  %v1541_v50 = vadd.f32 %v2919_v38, %v1303_v42 }
 0x229   :  { %v1542_v55 = vadd.f32 %v2922_v4, %v1304_v24  ;;  %v1543_v22 = vadd.f32 %v2925_v5, %v1305_v53 }
 0x22a   :  { %v1748_v57 = vmax.f32 %v1540_v54, 0.0  ;;  %v1749_v58 = vmax.f32 %v1541_v50, 0.0 }
 0x22b   :  { %v1750_v60 = vmax.f32 %v1542_v55, 0.0  ;;  %v1751_v6 = vmax.f32 %v1543_v22, 0.0 }
 0x22c   :  { %1956 = vst [vmem:[#allocation10 + $0x3f0] sm:$0xff] %v1748_v57 }
 0x22d   :  { %1957 = vst [vmem:[#allocation10 + $0x3f8] sm:$0xff] %v1749_v58  ;;  %v933_v1 = vpop.f32.mrf.mxu1  ;;  %v998_v61 = vpop.f32.mrf.mxu2 }
 0x22e   :  { %1958 = vst [vmem:[#allocation10 + $0x400] sm:$0xff] %v1750_v60  ;;  %v1315_v15 = vmul.f32 %v2904_v63, %v933_v1  ;;  %v1316_v19 = vmul.f32 %v2907_v33, %v998_v61  ;;  %v1063_v20 = vpop.f32.mrf.mxu3  ;;  %v1128_v62 = vpop.f32.mrf.mxu0 }
 0x22f   :  { %1959 = vst [vmem:[#allocation10 + $0x408] sm:$0xff] %v1751_v6  ;;  %v1317_v17 = vmul.f32 %v2910_v36, %v1063_v20  ;;  %v1318_v34 = vmul.f32 %v2913_v51, %v1128_v62 }
 0x230   :  { %v1553_v25 = vadd.f32 %v2916_v2, %v1315_v15  ;;  %v1554_v44 = vadd.f32 %v2919_v38, %v1316_v19 }
 0x231   :  { %v1555_v43 = vadd.f32 %v2922_v4, %v1317_v17  ;;  %v1556_v8 = vadd.f32 %v2925_v5, %v1318_v34 }
 0x232   :  { %v1761_v9 = vmax.f32 %v1553_v25, 0.0  ;;  %v1762_v10 = vmax.f32 %v1554_v44, 0.0 }
 0x233   :  { %v1763_v11 = vmax.f32 %v1555_v43, 0.0  ;;  %v1764_v12 = vmax.f32 %v1556_v8, 0.0 }
 0x234   :  { %1969 = vst [vmem:[#allocation10 + $0x458] sm:$0xff] %v1761_v9 }
 0x235   :  { %1970 = vst [vmem:[#allocation10 + $0x460] sm:$0xff] %v1762_v10  ;;  %v936_v13 = vpop.f32.mrf.mxu1  ;;  %v1001_v14 = vpop.f32.mrf.mxu2 }
 0x236   :  { %1971 = vst [vmem:[#allocation10 + $0x468] sm:$0xff] %v1763_v11  ;;  %v1328_v59 = vmul.f32 %v2904_v63, %v936_v13  ;;  %v1329_v21 = vmul.f32 %v2907_v33, %v1001_v14  ;;  %v1066_v30 = vpop.f32.mrf.mxu3  ;;  %v1131_v35 = vpop.f32.mrf.mxu0 }
 0x237   :  { %1972 = vst [vmem:[#allocation10 + $0x470] sm:$0xff] %v1764_v12  ;;  %v1330_v41 = vmul.f32 %v2910_v36, %v1066_v30  ;;  %v1331_v26 = vmul.f32 %v2913_v51, %v1131_v35 }
 0x238   :  { %v1566_v18 = vadd.f32 %v2916_v2, %v1328_v59  ;;  %v1567_v52 = vadd.f32 %v2919_v38, %v1329_v21 }
 0x239   :  { %v1568_v28 = vadd.f32 %v2922_v4, %v1330_v41  ;;  %v1569_v29 = vadd.f32 %v2925_v5, %v1331_v26 }
 0x23a   :  { %v1774_v32 = vmax.f32 %v1566_v18, 0.0  ;;  %v1775_v7 = vmax.f32 %v1567_v52, 0.0 }
 0x23b   :  { %v1776_v0 = vmax.f32 %v1568_v28, 0.0  ;;  %v1777_v45 = vmax.f32 %v1569_v29, 0.0 }
 0x23c   :  { %1982 = vst [vmem:[#allocation10 + $0x4c0] sm:$0xff] %v1774_v32 }
 0x23d   :  { %1983 = vst [vmem:[#allocation10 + $0x4c8] sm:$0xff] %v1775_v7  ;;  %v939_v23 = vpop.f32.mrf.mxu1  ;;  %v1004_v46 = vpop.f32.mrf.mxu2 }
 0x23e   :  { %1984 = vst [vmem:[#allocation10 + $0x4d0] sm:$0xff] %v1776_v0  ;;  %v1341_v37 = vmul.f32 %v2904_v63, %v939_v23  ;;  %v1342_v27 = vmul.f32 %v2907_v33, %v1004_v46  ;;  %v1069_v47 = vpop.f32.mrf.mxu3  ;;  %v1134_v39 = vpop.f32.mrf.mxu0 }
 0x23f   :  { %1985 = vst [vmem:[#allocation10 + $0x4d8] sm:$0xff] %v1777_v45  ;;  %v1343_v40 = vmul.f32 %v2910_v36, %v1069_v47  ;;  %v1344_v3 = vmul.f32 %v2913_v51, %v1134_v39 }
 0x240   :  { %v1579_v56 = vadd.f32 %v2916_v2, %v1341_v37  ;;  %v1580_v31 = vadd.f32 %v2919_v38, %v1342_v27 }
 0x241   :  { %v1581_v16 = vadd.f32 %v2922_v4, %v1343_v40  ;;  %v1582_v42 = vadd.f32 %v2925_v5, %v1344_v3 }
 0x242   :  { %v1787_v48 = vmax.f32 %v1579_v56, 0.0  ;;  %v1788_v49 = vmax.f32 %v1580_v31, 0.0 }
 0x243   :  { %v1789_v24 = vmax.f32 %v1581_v16, 0.0  ;;  %v1790_v53 = vmax.f32 %v1582_v42, 0.0 }
 0x244   :  { %1995 = vst [vmem:[#allocation10 + $0x528] sm:$0xff] %v1787_v48 }
 0x245   :  { %1996 = vst [vmem:[#allocation10 + $0x530] sm:$0xff] %v1788_v49  ;;  %v942_v54 = vpop.f32.mrf.mxu1  ;;  %v1007_v50 = vpop.f32.mrf.mxu2 }
 0x246   :  { %1997 = vst [vmem:[#allocation10 + $0x538] sm:$0xff] %v1789_v24  ;;  %v1354_v55 = vmul.f32 %v2904_v63, %v942_v54  ;;  %v1355_v22 = vmul.f32 %v2907_v33, %v1007_v50  ;;  %v1072_v57 = vpop.f32.mrf.mxu3  ;;  %v1137_v58 = vpop.f32.mrf.mxu0 }
 0x247   :  { %1998 = vst [vmem:[#allocation10 + $0x540] sm:$0xff] %v1790_v53  ;;  %v1356_v60 = vmul.f32 %v2910_v36, %v1072_v57  ;;  %v1357_v6 = vmul.f32 %v2913_v51, %v1137_v58 }
 0x248   :  { %v1592_v1 = vadd.f32 %v2916_v2, %v1354_v55  ;;  %v1593_v61 = vadd.f32 %v2919_v38, %v1355_v22 }
 0x249   :  { %v1594_v15 = vadd.f32 %v2922_v4, %v1356_v60  ;;  %v1595_v19 = vadd.f32 %v2925_v5, %v1357_v6 }
 0x24a   :  { %v1800_v20 = vmax.f32 %v1592_v1, 0.0  ;;  %v1801_v62 = vmax.f32 %v1593_v61, 0.0 }
 0x24b   :  { %v1802_v17 = vmax.f32 %v1594_v15, 0.0  ;;  %v1803_v34 = vmax.f32 %v1595_v19, 0.0 }
 0x24c   :  { %2008 = vst [vmem:[#allocation10 + $0x590] sm:$0xff] %v1800_v20 }
 0x24d   :  { %2009 = vst [vmem:[#allocation10 + $0x598] sm:$0xff] %v1801_v62  ;;  %v945_v25 = vpop.f32.mrf.mxu1  ;;  %v1010_v44 = vpop.f32.mrf.mxu2 }
 0x24e   :  { %2010 = vst [vmem:[#allocation10 + $0x5a0] sm:$0xff] %v1802_v17  ;;  %v1367_v43 = vmul.f32 %v2904_v63, %v945_v25  ;;  %v1368_v8 = vmul.f32 %v2907_v33, %v1010_v44  ;;  %v1075_v9 = vpop.f32.mrf.mxu3  ;;  %v1140_v10 = vpop.f32.mrf.mxu0 }
 0x24f   :  { %2011 = vst [vmem:[#allocation10 + $0x5a8] sm:$0xff] %v1803_v34  ;;  %v1369_v11 = vmul.f32 %v2910_v36, %v1075_v9  ;;  %v1370_v12 = vmul.f32 %v2913_v51, %v1140_v10 }
 0x250   :  { %v1605_v13 = vadd.f32 %v2916_v2, %v1367_v43  ;;  %v1606_v14 = vadd.f32 %v2919_v38, %v1368_v8 }
 0x251   :  { %v1607_v59 = vadd.f32 %v2922_v4, %v1369_v11  ;;  %v1608_v21 = vadd.f32 %v2925_v5, %v1370_v12 }
 0x252   :  { %v1813_v30 = vmax.f32 %v1605_v13, 0.0  ;;  %v1814_v35 = vmax.f32 %v1606_v14, 0.0 }
 0x253   :  { %v1815_v41 = vmax.f32 %v1607_v59, 0.0  ;;  %v1816_v26 = vmax.f32 %v1608_v21, 0.0 }
 0x254   :  { %2021 = vst [vmem:[#allocation10 + $0x5f8] sm:$0xff] %v1813_v30 }
 0x255   :  { %2022 = vst [vmem:[#allocation10 + $0x600] sm:$0xff] %v1814_v35  ;;  %v948_v18 = vpop.f32.mrf.mxu1  ;;  %v1013_v52 = vpop.f32.mrf.mxu2 }
 0x256   :  { %2023 = vst [vmem:[#allocation10 + $0x608] sm:$0xff] %v1815_v41  ;;  %v1380_v28 = vmul.f32 %v2904_v63, %v948_v18  ;;  %v1381_v29 = vmul.f32 %v2907_v33, %v1013_v52  ;;  %v1078_v32 = vpop.f32.mrf.mxu3  ;;  %v1143_v7 = vpop.f32.mrf.mxu0 }
 0x257   :  { %2024 = vst [vmem:[#allocation10 + $0x610] sm:$0xff] %v1816_v26  ;;  %v1382_v0 = vmul.f32 %v2910_v36, %v1078_v32  ;;  %v1383_v45 = vmul.f32 %v2913_v51, %v1143_v7 }
 0x258   :  { %v1618_v23 = vadd.f32 %v2916_v2, %v1380_v28  ;;  %v1619_v46 = vadd.f32 %v2919_v38, %v1381_v29 }
 0x259   :  { %v1620_v37 = vadd.f32 %v2922_v4, %v1382_v0  ;;  %v1621_v27 = vadd.f32 %v2925_v5, %v1383_v45 }
 0x25a   :  { %v1826_v47 = vmax.f32 %v1618_v23, 0.0  ;;  %v1827_v39 = vmax.f32 %v1619_v46, 0.0 }
 0x25b   :  { %v1828_v63 = vmax.f32 %v1620_v37, 0.0  ;;  %v1829_v33 = vmax.f32 %v1621_v27, 0.0 }
 0x25c   :  { %2034 = vst [vmem:[#allocation10 + $0x660] sm:$0xff] %v1826_v47 }
 0x25d   :  { %2035 = vst [vmem:[#allocation10 + $0x668] sm:$0xff] %v1827_v39 }
 0x25e   :  { %2036 = vst [vmem:[#allocation10 + $0x670] sm:$0xff] %v1828_v63 }
 0x25f   :  { %2037 = vst [vmem:[#allocation10 + $0x678] sm:$0xff] %v1829_v33 }
 0x260   :  { %2050 = dma.vmem_to_hbm [thread:$0]  %s2043_s3, 26624, %s2045_s13, [#allocation4], %s2263_s23, %s2263_s23, %s2264_s24  }
 0x261   :  { %2260 = dma.done.wait [#allocation4], 26624  }
 0x262   :  { %2261 = vsyncadd [#allocation4], 4294940672 }
 0x263   :  { %2055 = vsyncpa [#allocation3], 1 }
 0x264   :  { %2056 = vsyncpa [#allocation6], 1 }
 0x265   :  { %2057 = vsyncpa [#allocation9], 1 }
 0x266   :  { %2058 = vsyncpa [#allocation4], 1 }

</bundles_post_ra>
